<compile_context>
chip_gen: v7x
topology: tpu7x:2x2x1
jax: 0.10.0
libtpu: 0.0.40
codegen_flags: <defaults>
</compile_context>

<pallas_src>
import functools
import math

import jax
import jax.numpy as jnp
from jax import lax
from jax.experimental import pallas as pl
from jax.experimental.pallas import tpu as pltpu


# ----------------------------------------------------------------------------
# helpers
# ----------------------------------------------------------------------------
def _row_tile(m):
    """Largest row tile (multiple of 8) that divides m; falls back to m."""
    for t in (512, 256, 128, 64, 32, 16, 8):
        if t <= m and m % t == 0:
            return t
    return m


# ----------------------------------------------------------------------------
# Pallas kernels
# ----------------------------------------------------------------------------
def _matmul_bias_kernel(x_ref, w_ref, b_ref, o_ref):
    # y = x @ w + b   (bf16 operands, f32 accumulation, bf16 output)
    y = jnp.dot(x_ref[...], w_ref[...], preferred_element_type=jnp.float32)
    o_ref[...] = (y + b_ref[...]).astype(o_ref.dtype)


def _attn_out_res_ln_kernel(ctx_ref, res_ref, w_ref, b_ref, g_ref, beta_ref,
                            o_ref, *, eps):
    # fused: attention-output projection + residual add + LayerNorm
    y = jnp.dot(ctx_ref[...], w_ref[...], preferred_element_type=jnp.float32)
    y = y + b_ref[...] + res_ref[...].astype(jnp.float32)
    mean = jnp.mean(y, axis=-1, keepdims=True)
    var = jnp.mean((y - mean) ** 2, axis=-1, keepdims=True)
    o_ref[...] = ((y - mean) * lax.rsqrt(var + eps) * g_ref[...]
                  + beta_ref[...]).astype(o_ref.dtype)


def _ffn_res_ln_kernel(x_ref, wi_ref, bi_ref, wo_ref, bo_ref, g_ref, beta_ref,
                       o_ref, *, eps):
    # fused FFN: x @ Wi + bi -> GELU -> @ Wo + bo -> +residual -> LayerNorm
    # (the [tile_m, INTER] intermediate lives only in VMEM/vregs)
    x = x_ref[...]
    h = jnp.dot(x, wi_ref[...], preferred_element_type=jnp.float32) + bi_ref[...]
    # NOTE: tanh-approx GELU (HF BERT default is the erf form; differs <1e-3)
    c = math.sqrt(2.0 / math.pi)
    h = 0.5 * h * (1.0 + jnp.tanh(c * (h + 0.044715 * h * h * h)))
    y = jnp.dot(h.astype(wo_ref.dtype), wo_ref[...],
                preferred_element_type=jnp.float32)
    y = y + bo_ref[...] + x.astype(jnp.float32)
    mean = jnp.mean(y, axis=-1, keepdims=True)
    var = jnp.mean((y - mean) ** 2, axis=-1, keepdims=True)
    o_ref[...] = ((y - mean) * lax.rsqrt(var + eps) * g_ref[...]
                  + beta_ref[...]).astype(o_ref.dtype)


def _layernorm_kernel(x_ref, g_ref, b_ref, o_ref, *, eps):
    x = x_ref[...].astype(jnp.float32)
    mean = jnp.mean(x, axis=-1, keepdims=True)
    var = jnp.mean((x - mean) ** 2, axis=-1, keepdims=True)
    o_ref[...] = ((x - mean) * lax.rsqrt(var + eps) * g_ref[...]
                  + b_ref[...]).astype(o_ref.dtype)


def _attention_kernel(qkv_ref, mask_ref, o_ref, *, num_heads, head_dim,
                      hidden, scale):
    # One batch element per grid step; heads split in-kernel via static lane
    # slices of the fused [S, 3H] QKV slab.  Output is lane-dense [S, H].
    # (For S >= 512, grid over (batch, head) + a KV-tile online softmax loop
    #  would be used instead; unnecessary at these sizes.)
    qkv = qkv_ref[0]                         # [S, 3H]  (bf16)
    mask = mask_ref[0]                       # [1, S]   additive bias (f32)
    ctx = []
    for h in range(num_heads):               # small static loop
        q = qkv[:, h * head_dim:(h + 1) * head_dim]
        k = qkv[:, hidden + h * head_dim:hidden + (h + 1) * head_dim]
        v = qkv[:, 2 * hidden + h * head_dim:2 * hidden + (h + 1) * head_dim]
        s = lax.dot_general(q, k, (((1,), (1,)), ((), ())),
                            preferred_element_type=jnp.float32) * scale
        s = s + mask                         # broadcast over query rows
        s = s - jnp.max(s, axis=-1, keepdims=True)
        p = jnp.exp(s)
        p = p * pl.reciprocal(jnp.sum(p, axis=-1, keepdims=True), approx=True)
        ctx.append(jnp.dot(p.astype(v.dtype), v,
                           preferred_element_type=jnp.float32))
    o_ref[0] = jnp.concatenate(ctx, axis=-1).astype(o_ref.dtype)


def _avg_pool_kernel(enc_ref, idx_ref, o_ref):
    # Replicates My_Bert_Encoder.average_pooling for one batch element.
    # Index value 0 marks a padding slot (same convention as the torch code's
    # masked_fill on token_subword_index.eq(0)).
    enc = enc_ref[0].astype(jnp.float32)     # [S, H]
    idx = idx_ref[0]                         # [T, Nsub] int32
    t, nsub = idx.shape
    s = enc.shape[0]
    iota = lax.broadcasted_iota(jnp.int32, (t, s), 1)
    sel = jnp.zeros((t, s), jnp.float32)
    for j in range(nsub):                    # small static loop
        col = idx[:, j:j + 1]                # [T, 1]
        hit = jnp.logical_and(col == iota, col != 0)
        sel = sel + jnp.where(hit, 1.0, 0.0)
    sums = jnp.dot(sel, enc, preferred_element_type=jnp.float32)   # [T, H]
    counts = jnp.sum(sel, axis=1, keepdims=True)                   # valid subwords
    divisor = counts + jnp.where(counts == 0.0, 1.0, 0.0)          # pad guard
    o_ref[0] = sums / divisor


# ----------------------------------------------------------------------------
# Pallas wrappers
# ----------------------------------------------------------------------------
_PARALLEL_1D = pltpu.CompilerParams(dimension_semantics=("parallel",))


def qkv_projection(x, w, b):
    m, k = x.shape
    n = w.shape[1]
    tm = _row_tile(m)
    return pl.pallas_call(
        _matmul_bias_kernel,
        out_shape=jax.ShapeDtypeStruct((m, n), x.dtype),
        grid=(m // tm,),
        in_specs=[pl.BlockSpec((tm, k), lambda i: (i, 0)),
                  pl.BlockSpec((k, n), lambda i: (0, 0)),
                  pl.BlockSpec((1, n), lambda i: (0, 0))],
        out_specs=pl.BlockSpec((tm, n), lambda i: (i, 0)),
        compiler_params=_PARALLEL_1D,
    )(x, w, b)


def attn_out_residual_layernorm(ctx, res, w, b, g, beta, eps=1e-12):
    m, k = ctx.shape
    n = w.shape[1]
    tm = _row_tile(m)
    return pl.pallas_call(
        functools.partial(_attn_out_res_ln_kernel, eps=eps),
        out_shape=jax.ShapeDtypeStruct((m, n), res.dtype),
        grid=(m // tm,),
        in_specs=[pl.BlockSpec((tm, k), lambda i: (i, 0)),
                  pl.BlockSpec((tm, n), lambda i: (i, 0)),
                  pl.BlockSpec((k, n), lambda i: (0, 0)),
                  pl.BlockSpec((1, n), lambda i: (0, 0)),
                  pl.BlockSpec((1, n), lambda i: (0, 0)),
                  pl.BlockSpec((1, n), lambda i: (0, 0))],
        out_specs=pl.BlockSpec((tm, n), lambda i: (i, 0)),
        compiler_params=_PARALLEL_1D,
    )(ctx, res, w, b, g, beta)


def ffn_residual_layernorm(x, wi, bi, wo, bo, g, beta, eps=1e-12):
    # NOTE: for production shapes on v7x (64 MiB VMEM) this kernel would also
    # tile over INTER (K of the second matmul) with an accumulator scratch;
    # at the sizes used here whole-K blocks fit comfortably.
    m, h = x.shape
    inter = wi.shape[1]
    tm = _row_tile(m)
    return pl.pallas_call(
        functools.partial(_ffn_res_ln_kernel, eps=eps),
        out_shape=jax.ShapeDtypeStruct((m, h), x.dtype),
        grid=(m // tm,),
        in_specs=[pl.BlockSpec((tm, h), lambda i: (i, 0)),
                  pl.BlockSpec((h, inter), lambda i: (0, 0)),
                  pl.BlockSpec((1, inter), lambda i: (0, 0)),
                  pl.BlockSpec((inter, h), lambda i: (0, 0)),
                  pl.BlockSpec((1, h), lambda i: (0, 0)),
                  pl.BlockSpec((1, h), lambda i: (0, 0)),
                  pl.BlockSpec((1, h), lambda i: (0, 0))],
        out_specs=pl.BlockSpec((tm, h), lambda i: (i, 0)),
        compiler_params=_PARALLEL_1D,
    )(x, wi, bi, wo, bo, g, beta)


def layernorm(x, gamma, beta, eps=1e-12, out_dtype=jnp.bfloat16):
    m, h = x.shape
    tm = _row_tile(m)
    return pl.pallas_call(
        functools.partial(_layernorm_kernel, eps=eps),
        out_shape=jax.ShapeDtypeStruct((m, h), out_dtype),
        grid=(m // tm,),
        in_specs=[pl.BlockSpec((tm, h), lambda i: (i, 0)),
                  pl.BlockSpec((1, h), lambda i: (0, 0)),
                  pl.BlockSpec((1, h), lambda i: (0, 0))],
        out_specs=pl.BlockSpec((tm, h), lambda i: (i, 0)),
        compiler_params=_PARALLEL_1D,
    )(x, gamma, beta)


def attention(qkv, mask_bias, *, num_heads, hidden):
    b, s, three_h = qkv.shape
    head_dim = hidden // num_heads
    scale = 1.0 / math.sqrt(head_dim)
    return pl.pallas_call(
        functools.partial(_attention_kernel, num_heads=num_heads,
                          head_dim=head_dim, hidden=hidden, scale=scale),
        out_shape=jax.ShapeDtypeStruct((b, s, hidden), qkv.dtype),
        grid=(b,),
        in_specs=[pl.BlockSpec((1, s, three_h), lambda i: (i, 0, 0)),
                  pl.BlockSpec((1, 1, s), lambda i: (i, 0, 0))],
        out_specs=pl.BlockSpec((1, s, hidden), lambda i: (i, 0, 0)),
        compiler_params=_PARALLEL_1D,
    )(qkv, mask_bias)


def average_pooling(encoded, subword_index):
    b, s, h = encoded.shape
    _, t, nsub = subword_index.shape
    return pl.pallas_call(
        _avg_pool_kernel,
        out_shape=jax.ShapeDtypeStruct((b, t, h), jnp.float32),
        grid=(b,),
        in_specs=[pl.BlockSpec((1, s, h), lambda i: (i, 0, 0)),
                  pl.BlockSpec((1, t, nsub), lambda i: (i, 0, 0))],
        out_specs=pl.BlockSpec((1, t, h), lambda i: (i, 0, 0)),
        compiler_params=_PARALLEL_1D,
    )(encoded, subword_index.astype(jnp.int32))


# ----------------------------------------------------------------------------
# Mini BERT model (deterministic synthetic parameters)
# ----------------------------------------------------------------------------
def init_params(key, *, vocab, max_pos, type_vocab, hidden, inter, num_layers):
    def nrm(k, shape, dtype=jnp.bfloat16):
        return (0.02 * jax.random.normal(k, shape)).astype(dtype)

    ks = iter(jax.random.split(key, 8 + 4 * num_layers))
    zeros = lambda *s: jnp.zeros(s, jnp.float32)
    ones = lambda *s: jnp.ones(s, jnp.float32)
    params = {
        "word_emb": nrm(next(ks), (vocab, hidden), jnp.float32),
        "pos_emb": nrm(next(ks), (max_pos, hidden), jnp.float32),
        "type_emb": nrm(next(ks), (type_vocab, hidden), jnp.float32),
        "emb_ln_g": ones(1, hidden), "emb_ln_b": zeros(1, hidden),
        "pool_w": nrm(next(ks), (hidden, hidden), jnp.float32),
        "pool_b": zeros(hidden),
        "layers": [],
    }
    for _ in range(num_layers):
        params["layers"].append({
            # fused QKV projection weight/bias
            "qkv_w": nrm(next(ks), (hidden, 3 * hidden)),
            "qkv_b": zeros(1, 3 * hidden),
            "ao_w": nrm(next(ks), (hidden, hidden)), "ao_b": zeros(1, hidden),
            "ao_ln_g": ones(1, hidden), "ao_ln_b": zeros(1, hidden),
            "i_w": nrm(next(ks), (hidden, inter)), "i_b": zeros(1, inter),
            "o_w": nrm(next(ks), (inter, hidden)), "o_b": zeros(1, hidden),
            "o_ln_g": ones(1, hidden), "o_ln_b": zeros(1, hidden),
        })
    return params


def bert_layer(p, x2, mask_bias, *, batch, seq, hidden, num_heads):
    # x2: [B*S, H] bf16 residual stream
    qkv = qkv_projection(x2, p["qkv_w"], p["qkv_b"])              # [B*S, 3H]
    ctx = attention(qkv.reshape(batch, seq, 3 * hidden), mask_bias,
                    num_heads=num_heads, hidden=hidden)           # [B, S, H]
    ctx = ctx.reshape(batch * seq, hidden)                        # view only
    x2 = attn_out_residual_layernorm(ctx, x2, p["ao_w"], p["ao_b"],
                                     p["ao_ln_g"], p["ao_ln_b"])
    x2 = ffn_residual_layernorm(x2, p["i_w"], p["i_b"], p["o_w"], p["o_b"],
                                p["o_ln_g"], p["o_ln_b"])
    return x2


def bert_embedder_forward(params, input_ids, token_type_ids, attention_mask,
                          token_subword_index, *, num_heads):
    """Mirrors Bert_Embedder.forward with split=True,
    output_all_encoder_layers=False: returns (avg-pooled embeddings, pooled)."""
    b, s = input_ids.shape
    h = params["word_emb"].shape[1]

    # Embeddings (gathers are XLA glue; LayerNorm is the Pallas hot path)
    pos_ids = jnp.arange(s, dtype=jnp.int32)
    x = (jnp.take(params["word_emb"], input_ids, axis=0)
         + jnp.take(params["pos_emb"], pos_ids, axis=0)[None, :, :]
         + jnp.take(params["type_emb"], token_type_ids, axis=0))   # f32
    x2 = layernorm(x.reshape(b * s, h),
                   params["emb_ln_g"], params["emb_ln_b"])         # bf16

    # Extended attention mask: (1 - mask) * -10000, as in BertModel
    mask_bias = ((1.0 - attention_mask.astype(jnp.float32)) * -10000.0
                 ).reshape(b, 1, s)

    for layer in params["layers"]:
        x2 = bert_layer(layer, x2, mask_bias, batch=b, seq=s, hidden=h,
                        num_heads=num_heads)

    x = x2.reshape(b, s, h)

    # Pooler: Linear + Tanh on [CLS] — tiny matmul, kept in plain XLA
    cls = x[:, 0, :].astype(jnp.float32)
    pooled = jnp.tanh(cls @ params["pool_w"] + params["pool_b"])

    # Subword average pooling (My_Bert_Encoder.average_pooling)
    avg_token_reprs = average_pooling(x, token_subword_index)
    return avg_token_reprs, pooled


# ----------------------------------------------------------------------------
# Main
# ----------------------------------------------------------------------------
if __name__ == "__main__":
    B, S, H, NH, INTER, LAYERS = 2, 12, 32, 2, 64, 2
    VOCAB, MAX_POS, TYPE_VOCAB = 50, 64, 2
    T, NSUB = 8, 3                      # token_subword_index dims
    PAD_ID, CLS_ID, SEP_ID = 0, 2, 3

    key = jax.random.PRNGKey(0)
    k_par, k_ids, k_idx = jax.random.split(key, 3)

    params = init_params(k_par, vocab=VOCAB, max_pos=MAX_POS,
                         type_vocab=TYPE_VOCAB, hidden=H, inter=INTER,
                         num_layers=LAYERS)

    # Synthetic tokenized batch (what the tokenizer would produce):
    lengths = jnp.array([12, 9], dtype=jnp.int32)
    pos = jnp.arange(S, dtype=jnp.int32)[None, :]
    ids = jax.random.randint(k_ids, (B, S), 4, VOCAB, dtype=jnp.int32)
    ids = jnp.where(pos >= lengths[:, None], PAD_ID, ids)        # padding
    ids = jnp.where(pos == lengths[:, None] - 1, SEP_ID, ids)    # [SEP]
    ids = ids.at[:, 0].set(CLS_ID)                               # [CLS]

    attention_mask = (ids != PAD_ID).astype(jnp.int32)
    # token_type_ids: 0 until [SEP] is seen, then 1 (as in the module)
    token_type_ids = (jnp.cumsum((ids == SEP_ID).astype(jnp.int32), axis=1)
                      >= 1).astype(jnp.int32)
    # subword gather table; 0 entries are padding slots (module convention)
    token_subword_index = jax.random.randint(k_idx, (B, T, NSUB), 0, S,
                                             dtype=jnp.int32)

    fwd = jax.jit(functools.partial(bert_embedder_forward, num_heads=NH))
    avg_reprs, pooled = fwd(params, ids, token_type_ids, attention_mask,
                            token_subword_index)
    jax.block_until_ready((avg_reprs, pooled))

    assert avg_reprs.shape == (B, T, H)
    assert pooled.shape == (B, H)
    assert jnp.all(jnp.isfinite(avg_reprs)) and jnp.all(jnp.isfinite(pooled))
    print("KERNEL_OK")
</pallas_src>

<mosaic_0001>
module attributes {stable_mosaic.version = 11 : i64} {
  func.func @_attn_out_res_ln_kernel(%arg0: i32, %arg1: memref<8x32xbf16, #tpu.memory_space<vmem>>, %arg2: memref<8x32xbf16, #tpu.memory_space<vmem>>, %arg3: memref<32x32xbf16, #tpu.memory_space<vmem>>, %arg4: memref<1x32xf32, #tpu.memory_space<vmem>>, %arg5: memref<1x32xf32, #tpu.memory_space<vmem>>, %arg6: memref<1x32xf32, #tpu.memory_space<vmem>>, %arg7: memref<8x32xbf16, #tpu.memory_space<vmem>>) attributes {dimension_semantics = [#tpu.dimension_semantics<parallel>], iteration_bounds = array<i64: 3>, scalar_prefetch = 0 : i64, scratch_operands = 0 : i64, tpu.core_type = #tpu.core_type<tc>, window_params = [{transform_indices = @transform_0, window_bounds = array<i64: 8, 32>}, {transform_indices = @transform_1, window_bounds = array<i64: 8, 32>}, {pipeline_mode = #tpu.pipeline_mode<synchronous>, transform_indices = @transform_2, window_bounds = array<i64: 32, 32>}, {pipeline_mode = #tpu.pipeline_mode<synchronous>, transform_indices = @transform_3, window_bounds = array<i64: 1, 32>}, {pipeline_mode = #tpu.pipeline_mode<synchronous>, transform_indices = @transform_4, window_bounds = array<i64: 1, 32>}, {pipeline_mode = #tpu.pipeline_mode<synchronous>, transform_indices = @transform_5, window_bounds = array<i64: 1, 32>}, {transform_indices = @transform_6, window_bounds = array<i64: 8, 32>}]} {
    %c0 = arith.constant 0 : index
    %c0_0 = arith.constant 0 : index
    %0 = vector.load %arg1[%c0, %c0_0] : memref<8x32xbf16, #tpu.memory_space<vmem>>, vector<8x32xbf16>
    %c0_1 = arith.constant 0 : index
    %c0_2 = arith.constant 0 : index
    %1 = vector.load %arg3[%c0_1, %c0_2] : memref<32x32xbf16, #tpu.memory_space<vmem>>, vector<32x32xbf16>
    %cst = arith.constant dense<0.000000e+00> : vector<8x32xf32>
    %2 = tpu.matmul %0, %1, %cst {dimension_numbers = #tpu.dot_dimension_numbers<[1], [0], [0], [1], [0, 0, 1, 1], [], []>} : vector<8x32xbf16>, vector<32x32xbf16>, vector<8x32xf32> -> vector<8x32xf32>
    %c0_3 = arith.constant 0 : index
    %c0_4 = arith.constant 0 : index
    %3 = vector.load %arg4[%c0_3, %c0_4] : memref<1x32xf32, #tpu.memory_space<vmem>>, vector<1x32xf32>
    %4 = vector.broadcast %3 : vector<1x32xf32> to vector<8x32xf32>
    %5 = arith.addf %2, %4 : vector<8x32xf32>
    %c0_5 = arith.constant 0 : index
    %c0_6 = arith.constant 0 : index
    %6 = vector.load %arg2[%c0_5, %c0_6] : memref<8x32xbf16, #tpu.memory_space<vmem>>, vector<8x32xbf16>
    %7 = arith.extf %6 : vector<8x32xbf16> to vector<8x32xf32>
    %8 = arith.addf %5, %7 : vector<8x32xf32>
    %cst_7 = arith.constant dense<0.000000e+00> : vector<8xf32>
    %9 = vector.multi_reduction <add>, %8, %cst_7 [1] : vector<8x32xf32> to vector<8xf32>
    %10 = vector.shape_cast %9 : vector<8xf32> to vector<8x1xf32>
    %cst_8 = arith.constant 3.200000e+01 : f32
    %11 = vector.broadcast %cst_8 : f32 to vector<8x1xf32>
    %12 = arith.divf %10, %11 : vector<8x1xf32>
    %13 = vector.broadcast %12 : vector<8x1xf32> to vector<8x32xf32>
    %14 = arith.subf %8, %13 : vector<8x32xf32>
    %15 = arith.mulf %14, %14 : vector<8x32xf32>
    %cst_9 = arith.constant dense<0.000000e+00> : vector<8xf32>
    %16 = vector.multi_reduction <add>, %15, %cst_9 [1] : vector<8x32xf32> to vector<8xf32>
    %17 = vector.shape_cast %16 : vector<8xf32> to vector<8x1xf32>
    %cst_10 = arith.constant 3.200000e+01 : f32
    %18 = vector.broadcast %cst_10 : f32 to vector<8x1xf32>
    %19 = arith.divf %17, %18 : vector<8x1xf32>
    %20 = vector.broadcast %12 : vector<8x1xf32> to vector<8x32xf32>
    %21 = arith.subf %8, %20 : vector<8x32xf32>
    %cst_11 = arith.constant 9.99999996E-13 : f32
    %22 = vector.broadcast %cst_11 : f32 to vector<8x1xf32>
    %23 = arith.addf %19, %22 : vector<8x1xf32>
    %24 = math.rsqrt %23 : vector<8x1xf32>
    %25 = vector.broadcast %24 : vector<8x1xf32> to vector<8x32xf32>
    %26 = arith.mulf %21, %25 : vector<8x32xf32>
    %c0_12 = arith.constant 0 : index
    %c0_13 = arith.constant 0 : index
    %27 = vector.load %arg5[%c0_12, %c0_13] : memref<1x32xf32, #tpu.memory_space<vmem>>, vector<1x32xf32>
    %28 = vector.broadcast %27 : vector<1x32xf32> to vector<8x32xf32>
    %29 = arith.mulf %26, %28 : vector<8x32xf32>
    %c0_14 = arith.constant 0 : index
    %c0_15 = arith.constant 0 : index
    %30 = vector.load %arg6[%c0_14, %c0_15] : memref<1x32xf32, #tpu.memory_space<vmem>>, vector<1x32xf32>
    %31 = vector.broadcast %30 : vector<1x32xf32> to vector<8x32xf32>
    %32 = arith.addf %29, %31 : vector<8x32xf32>
    %33 = arith.truncf %32 : vector<8x32xf32> to vector<8x32xbf16>
    %c0_16 = arith.constant 0 : index
    %c0_17 = arith.constant 0 : index
    %34 = vector.load %arg7[%c0_16, %c0_17] : memref<8x32xbf16, #tpu.memory_space<vmem>>, vector<8x32xbf16>
    tpu.vector_store %arg7[%c0_16, %c0_17], %33 {strides = array<i32>} : memref<8x32xbf16, #tpu.memory_space<vmem>>, vector<8x32xbf16>,
    return
  }
  func.func @transform_0(%arg0: i32) -> (i32, i32) {
    %c0_i32 = arith.constant 0 : i32
    %c0_i32_0 = arith.constant 0 : i32
    return %arg0, %c0_i32 : i32, i32
  }
  func.func @transform_1(%arg0: i32) -> (i32, i32) {
    %c0_i32 = arith.constant 0 : i32
    %c0_i32_0 = arith.constant 0 : i32
    return %arg0, %c0_i32 : i32, i32
  }
  func.func @transform_2(%arg0: i32) -> (i32, i32) {
    %c0_i32 = arith.constant 0 : i32
    %c0_i32_0 = arith.constant 0 : i32
    %c0_i32_1 = arith.constant 0 : i32
    return %c0_i32, %c0_i32_0 : i32, i32
  }
  func.func @transform_3(%arg0: i32) -> (i32, i32) {
    %c0_i32 = arith.constant 0 : i32
    %c0_i32_0 = arith.constant 0 : i32
    %c0_i32_1 = arith.constant 0 : i32
    return %c0_i32, %c0_i32_0 : i32, i32
  }
  func.func @transform_4(%arg0: i32) -> (i32, i32) {
    %c0_i32 = arith.constant 0 : i32
    %c0_i32_0 = arith.constant 0 : i32
    %c0_i32_1 = arith.constant 0 : i32
    return %c0_i32, %c0_i32_0 : i32, i32
  }
  func.func @transform_5(%arg0: i32) -> (i32, i32) {
    %c0_i32 = arith.constant 0 : i32
    %c0_i32_0 = arith.constant 0 : i32
    %c0_i32_1 = arith.constant 0 : i32
    return %c0_i32, %c0_i32_0 : i32, i32
  }
  func.func @transform_6(%arg0: i32) -> (i32, i32) {
    %c0_i32 = arith.constant 0 : i32
    %c0_i32_0 = arith.constant 0 : i32
    return %arg0, %c0_i32 : i32, i32
  }
}

module attributes {stable_mosaic.version = 11 : i64} {
  func.func @_attention_kernel(%arg0: i32, %arg1: memref<1x12x96xbf16, #tpu.memory_space<vmem>>, %arg2: memref<1x1x12xf32, #tpu.memory_space<vmem>>, %arg3: memref<1x12x32xbf16, #tpu.memory_space<vmem>>) attributes {dimension_semantics = [#tpu.dimension_semantics<parallel>], iteration_bounds = array<i64: 2>, scalar_prefetch = 0 : i64, scratch_operands = 0 : i64, tpu.core_type = #tpu.core_type<tc>, window_params = [{transform_indices = @transform_0, window_bounds = array<i64: 1, 12, 96>}, {transform_indices = @transform_1, window_bounds = array<i64: 1, 1, 12>}, {transform_indices = @transform_2, window_bounds = array<i64: 1, 12, 32>}]} {
    %c0 = arith.constant 0 : index
    %c0_0 = arith.constant 0 : index
    %c0_1 = arith.constant 0 : index
    %0 = vector.load %arg1[%c0, %c0_0, %c0_1] : memref<1x12x96xbf16, #tpu.memory_space<vmem>>, vector<1x12x96xbf16>
    %1 = vector.shape_cast %0 : vector<1x12x96xbf16> to vector<12x96xbf16>
    %c0_2 = arith.constant 0 : index
    %c0_3 = arith.constant 0 : index
    %c0_4 = arith.constant 0 : index
    %2 = vector.load %arg2[%c0_2, %c0_3, %c0_4] : memref<1x1x12xf32, #tpu.memory_space<vmem>>, vector<1x1x12xf32>
    %3 = vector.shape_cast %2 : vector<1x1x12xf32> to vector<1x12xf32>
    %4 = vector.extract_strided_slice %1 {offsets = [0, 0], sizes = [12, 16], strides = [1, 1]} : vector<12x96xbf16> to vector<12x16xbf16>
    %5 = vector.extract_strided_slice %1 {offsets = [0, 32], sizes = [12, 16], strides = [1, 1]} : vector<12x96xbf16> to vector<12x16xbf16>
    %6 = vector.extract_strided_slice %1 {offsets = [0, 64], sizes = [12, 16], strides = [1, 1]} : vector<12x96xbf16> to vector<12x16xbf16>
    %cst = arith.constant dense<0.000000e+00> : vector<12x12xf32>
    %7 = tpu.matmul %4, %5, %cst {dimension_numbers = #tpu.dot_dimension_numbers<[1], [1], [0], [0], [0, 0, 1, 0], [], []>} : vector<12x16xbf16>, vector<12x16xbf16>, vector<12x12xf32> -> vector<12x12xf32>
    %cst_5 = arith.constant 2.500000e-01 : f32
    %8 = vector.broadcast %cst_5 : f32 to vector<12x12xf32>
    %9 = arith.mulf %7, %8 : vector<12x12xf32>
    %10 = vector.broadcast %3 : vector<1x12xf32> to vector<12x12xf32>
    %11 = arith.addf %9, %10 : vector<12x12xf32>
    %cst_6 = arith.constant dense<0xFF800000> : vector<12xf32>
    %12 = vector.multi_reduction <maximumf>, %11, %cst_6 [1] : vector<12x12xf32> to vector<12xf32>
    %13 = vector.shape_cast %12 : vector<12xf32> to vector<12x1xf32>
    %14 = vector.broadcast %13 : vector<12x1xf32> to vector<12x12xf32>
    %15 = arith.subf %11, %14 : vector<12x12xf32>
    %16 = math.exp %15 : vector<12x12xf32>
    %cst_7 = arith.constant dense<0.000000e+00> : vector<12xf32>
    %17 = vector.multi_reduction <add>, %16, %cst_7 [1] : vector<12x12xf32> to vector<12xf32>
    %18 = vector.shape_cast %17 : vector<12xf32> to vector<12x1xf32>
    %19 = tpu.reciprocal %18 {approx = true} : vector<12x1xf32> -> vector<12x1xf32>
    %20 = vector.broadcast %19 : vector<12x1xf32> to vector<12x12xf32>
    %21 = arith.mulf %16, %20 : vector<12x12xf32>
    %22 = arith.truncf %21 : vector<12x12xf32> to vector<12x12xbf16>
    %cst_8 = arith.constant dense<0.000000e+00> : vector<12x16xf32>
    %23 = tpu.matmul %22, %6, %cst_8 {dimension_numbers = #tpu.dot_dimension_numbers<[1], [0], [0], [1], [0, 0, 1, 1], [], []>} : vector<12x12xbf16>, vector<12x16xbf16>, vector<12x16xf32> -> vector<12x16xf32>
    %24 = vector.extract_strided_slice %1 {offsets = [0, 16], sizes = [12, 16], strides = [1, 1]} : vector<12x96xbf16> to vector<12x16xbf16>
    %25 = vector.extract_strided_slice %1 {offsets = [0, 48], sizes = [12, 16], strides = [1, 1]} : vector<12x96xbf16> to vector<12x16xbf16>
    %26 = vector.extract_strided_slice %1 {offsets = [0, 80], sizes = [12, 16], strides = [1, 1]} : vector<12x96xbf16> to vector<12x16xbf16>
    %cst_9 = arith.constant dense<0.000000e+00> : vector<12x12xf32>
    %27 = tpu.matmul %24, %25, %cst_9 {dimension_numbers = #tpu.dot_dimension_numbers<[1], [1], [0], [0], [0, 0, 1, 0], [], []>} : vector<12x16xbf16>, vector<12x16xbf16>, vector<12x12xf32> -> vector<12x12xf32>
    %cst_10 = arith.constant 2.500000e-01 : f32
    %28 = vector.broadcast %cst_10 : f32 to vector<12x12xf32>
    %29 = arith.mulf %27, %28 : vector<12x12xf32>
    %30 = vector.broadcast %3 : vector<1x12xf32> to vector<12x12xf32>
    %31 = arith.addf %29, %30 : vector<12x12xf32>
    %cst_11 = arith.constant dense<0xFF800000> : vector<12xf32>
    %32 = vector.multi_reduction <maximumf>, %31, %cst_11 [1] : vector<12x12xf32> to vector<12xf32>
    %33 = vector.shape_cast %32 : vector<12xf32> to vector<12x1xf32>
    %34 = vector.broadcast %33 : vector<12x1xf32> to vector<12x12xf32>
    %35 = arith.subf %31, %34 : vector<12x12xf32>
    %36 = math.exp %35 : vector<12x12xf32>
    %cst_12 = arith.constant dense<0.000000e+00> : vector<12xf32>
    %37 = vector.multi_reduction <add>, %36, %cst_12 [1] : vector<12x12xf32> to vector<12xf32>
    %38 = vector.shape_cast %37 : vector<12xf32> to vector<12x1xf32>
    %39 = tpu.reciprocal %38 {approx = true} : vector<12x1xf32> -> vector<12x1xf32>
    %40 = vector.broadcast %39 : vector<12x1xf32> to vector<12x12xf32>
    %41 = arith.mulf %36, %40 : vector<12x12xf32>
    %42 = arith.truncf %41 : vector<12x12xf32> to vector<12x12xbf16>
    %cst_13 = arith.constant dense<0.000000e+00> : vector<12x16xf32>
    %43 = tpu.matmul %42, %26, %cst_13 {dimension_numbers = #tpu.dot_dimension_numbers<[1], [0], [0], [1], [0, 0, 1, 1], [], []>} : vector<12x12xbf16>, vector<12x16xbf16>, vector<12x16xf32> -> vector<12x16xf32>
    %44 = tpu.concatenate %23, %43 in 1 : vector<12x16xf32>, vector<12x16xf32> -> vector<12x32xf32>
    %45 = arith.truncf %44 : vector<12x32xf32> to vector<12x32xbf16>
    %c0_14 = arith.constant 0 : index
    %c0_15 = arith.constant 0 : index
    %c0_16 = arith.constant 0 : index
    %46 = vector.load %arg3[%c0_14, %c0_15, %c0_16] : memref<1x12x32xbf16, #tpu.memory_space<vmem>>, vector<1x12x32xbf16>
    %47 = vector.shape_cast %46 : vector<1x12x32xbf16> to vector<12x32xbf16>
    %48 = vector.shape_cast %45 : vector<12x32xbf16> to vector<1x12x32xbf16>
    tpu.vector_store %arg3[%c0_14, %c0_15, %c0_16], %48 {strides = array<i32>} : memref<1x12x32xbf16, #tpu.memory_space<vmem>>, vector<1x12x32xbf16>,
    return
  }
  func.func @transform_0(%arg0: i32) -> (i32, i32, i32) {
    %c0_i32 = arith.constant 0 : i32
    %c0_i32_0 = arith.constant 0 : i32
    %c0_i32_1 = arith.constant 0 : i32
    return %arg0, %c0_i32, %c0_i32_0 : i32, i32, i32
  }
  func.func @transform_1(%arg0: i32) -> (i32, i32, i32) {
    %c0_i32 = arith.constant 0 : i32
    %c0_i32_0 = arith.constant 0 : i32
    %c0_i32_1 = arith.constant 0 : i32
    return %arg0, %c0_i32, %c0_i32_0 : i32, i32, i32
  }
  func.func @transform_2(%arg0: i32) -> (i32, i32, i32) {
    %c0_i32 = arith.constant 0 : i32
    %c0_i32_0 = arith.constant 0 : i32
    %c0_i32_1 = arith.constant 0 : i32
    return %arg0, %c0_i32, %c0_i32_0 : i32, i32, i32
  }
}

module attributes {stable_mosaic.version = 11 : i64} {
  func.func @_layernorm_kernel(%arg0: i32, %arg1: memref<8x32xf32, #tpu.memory_space<vmem>>, %arg2: memref<1x32xf32, #tpu.memory_space<vmem>>, %arg3: memref<1x32xf32, #tpu.memory_space<vmem>>, %arg4: memref<8x32xbf16, #tpu.memory_space<vmem>>) attributes {dimension_semantics = [#tpu.dimension_semantics<parallel>], iteration_bounds = array<i64: 3>, scalar_prefetch = 0 : i64, scratch_operands = 0 : i64, tpu.core_type = #tpu.core_type<tc>, window_params = [{transform_indices = @transform_0, window_bounds = array<i64: 8, 32>}, {pipeline_mode = #tpu.pipeline_mode<synchronous>, transform_indices = @transform_1, window_bounds = array<i64: 1, 32>}, {pipeline_mode = #tpu.pipeline_mode<synchronous>, transform_indices = @transform_2, window_bounds = array<i64: 1, 32>}, {transform_indices = @transform_3, window_bounds = array<i64: 8, 32>}]} {
    %c0 = arith.constant 0 : index
    %c0_0 = arith.constant 0 : index
    %0 = vector.load %arg1[%c0, %c0_0] : memref<8x32xf32, #tpu.memory_space<vmem>>, vector<8x32xf32>
    %cst = arith.constant dense<0.000000e+00> : vector<8xf32>
    %1 = vector.multi_reduction <add>, %0, %cst [1] : vector<8x32xf32> to vector<8xf32>
    %2 = vector.shape_cast %1 : vector<8xf32> to vector<8x1xf32>
    %cst_1 = arith.constant 3.200000e+01 : f32
    %3 = vector.broadcast %cst_1 : f32 to vector<8x1xf32>
    %4 = arith.divf %2, %3 : vector<8x1xf32>
    %5 = vector.broadcast %4 : vector<8x1xf32> to vector<8x32xf32>
    %6 = arith.subf %0, %5 : vector<8x32xf32>
    %7 = arith.mulf %6, %6 : vector<8x32xf32>
    %cst_2 = arith.constant dense<0.000000e+00> : vector<8xf32>
    %8 = vector.multi_reduction <add>, %7, %cst_2 [1] : vector<8x32xf32> to vector<8xf32>
    %9 = vector.shape_cast %8 : vector<8xf32> to vector<8x1xf32>
    %cst_3 = arith.constant 3.200000e+01 : f32
    %10 = vector.broadcast %cst_3 : f32 to vector<8x1xf32>
    %11 = arith.divf %9, %10 : vector<8x1xf32>
    %12 = vector.broadcast %4 : vector<8x1xf32> to vector<8x32xf32>
    %13 = arith.subf %0, %12 : vector<8x32xf32>
    %cst_4 = arith.constant 9.99999996E-13 : f32
    %14 = vector.broadcast %cst_4 : f32 to vector<8x1xf32>
    %15 = arith.addf %11, %14 : vector<8x1xf32>
    %16 = math.rsqrt %15 : vector<8x1xf32>
    %17 = vector.broadcast %16 : vector<8x1xf32> to vector<8x32xf32>
    %18 = arith.mulf %13, %17 : vector<8x32xf32>
    %c0_5 = arith.constant 0 : index
    %c0_6 = arith.constant 0 : index
    %19 = vector.load %arg2[%c0_5, %c0_6] : memref<1x32xf32, #tpu.memory_space<vmem>>, vector<1x32xf32>
    %20 = vector.broadcast %19 : vector<1x32xf32> to vector<8x32xf32>
    %21 = arith.mulf %18, %20 : vector<8x32xf32>
    %c0_7 = arith.constant 0 : index
    %c0_8 = arith.constant 0 : index
    %22 = vector.load %arg3[%c0_7, %c0_8] : memref<1x32xf32, #tpu.memory_space<vmem>>, vector<1x32xf32>
    %23 = vector.broadcast %22 : vector<1x32xf32> to vector<8x32xf32>
    %24 = arith.addf %21, %23 : vector<8x32xf32>
    %25 = arith.truncf %24 : vector<8x32xf32> to vector<8x32xbf16>
    %c0_9 = arith.constant 0 : index
    %c0_10 = arith.constant 0 : index
    %26 = vector.load %arg4[%c0_9, %c0_10] : memref<8x32xbf16, #tpu.memory_space<vmem>>, vector<8x32xbf16>
    tpu.vector_store %arg4[%c0_9, %c0_10], %25 {strides = array<i32>} : memref<8x32xbf16, #tpu.memory_space<vmem>>, vector<8x32xbf16>,
    return
  }
  func.func @transform_0(%arg0: i32) -> (i32, i32) {
    %c0_i32 = arith.constant 0 : i32
    %c0_i32_0 = arith.constant 0 : i32
    return %arg0, %c0_i32 : i32, i32
  }
  func.func @transform_1(%arg0: i32) -> (i32, i32) {
    %c0_i32 = arith.constant 0 : i32
    %c0_i32_0 = arith.constant 0 : i32
    %c0_i32_1 = arith.constant 0 : i32
    return %c0_i32, %c0_i32_0 : i32, i32
  }
  func.func @transform_2(%arg0: i32) -> (i32, i32) {
    %c0_i32 = arith.constant 0 : i32
    %c0_i32_0 = arith.constant 0 : i32
    %c0_i32_1 = arith.constant 0 : i32
    return %c0_i32, %c0_i32_0 : i32, i32
  }
  func.func @transform_3(%arg0: i32) -> (i32, i32) {
    %c0_i32 = arith.constant 0 : i32
    %c0_i32_0 = arith.constant 0 : i32
    return %arg0, %c0_i32 : i32, i32
  }
}

module attributes {stable_mosaic.version = 11 : i64} {
  func.func @_matmul_bias_kernel(%arg0: i32, %arg1: memref<8x32xbf16, #tpu.memory_space<vmem>>, %arg2: memref<32x96xbf16, #tpu.memory_space<vmem>>, %arg3: memref<1x96xf32, #tpu.memory_space<vmem>>, %arg4: memref<8x96xbf16, #tpu.memory_space<vmem>>) attributes {dimension_semantics = [#tpu.dimension_semantics<parallel>], iteration_bounds = array<i64: 3>, scalar_prefetch = 0 : i64, scratch_operands = 0 : i64, tpu.core_type = #tpu.core_type<tc>, window_params = [{transform_indices = @transform_0, window_bounds = array<i64: 8, 32>}, {pipeline_mode = #tpu.pipeline_mode<synchronous>, transform_indices = @transform_1, window_bounds = array<i64: 32, 96>}, {pipeline_mode = #tpu.pipeline_mode<synchronous>, transform_indices = @transform_2, window_bounds = array<i64: 1, 96>}, {transform_indices = @transform_3, window_bounds = array<i64: 8, 96>}]} {
    %c0 = arith.constant 0 : index
    %c0_0 = arith.constant 0 : index
    %0 = vector.load %arg1[%c0, %c0_0] : memref<8x32xbf16, #tpu.memory_space<vmem>>, vector<8x32xbf16>
    %c0_1 = arith.constant 0 : index
    %c0_2 = arith.constant 0 : index
    %1 = vector.load %arg2[%c0_1, %c0_2] : memref<32x96xbf16, #tpu.memory_space<vmem>>, vector<32x96xbf16>
    %cst = arith.constant dense<0.000000e+00> : vector<8x96xf32>
    %2 = tpu.matmul %0, %1, %cst {dimension_numbers = #tpu.dot_dimension_numbers<[1], [0], [0], [1], [0, 0, 1, 1], [], []>} : vector<8x32xbf16>, vector<32x96xbf16>, vector<8x96xf32> -> vector<8x96xf32>
    %c0_3 = arith.constant 0 : index
    %c0_4 = arith.constant 0 : index
    %3 = vector.load %arg3[%c0_3, %c0_4] : memref<1x96xf32, #tpu.memory_space<vmem>>, vector<1x96xf32>
    %4 = vector.broadcast %3 : vector<1x96xf32> to vector<8x96xf32>
    %5 = arith.addf %2, %4 : vector<8x96xf32>
    %6 = arith.truncf %5 : vector<8x96xf32> to vector<8x96xbf16>
    %c0_5 = arith.constant 0 : index
    %c0_6 = arith.constant 0 : index
    %7 = vector.load %arg4[%c0_5, %c0_6] : memref<8x96xbf16, #tpu.memory_space<vmem>>, vector<8x96xbf16>
    tpu.vector_store %arg4[%c0_5, %c0_6], %6 {strides = array<i32>} : memref<8x96xbf16, #tpu.memory_space<vmem>>, vector<8x96xbf16>,
    return
  }
  func.func @transform_0(%arg0: i32) -> (i32, i32) {
    %c0_i32 = arith.constant 0 : i32
    %c0_i32_0 = arith.constant 0 : i32
    return %arg0, %c0_i32 : i32, i32
  }
  func.func @transform_1(%arg0: i32) -> (i32, i32) {
    %c0_i32 = arith.constant 0 : i32
    %c0_i32_0 = arith.constant 0 : i32
    %c0_i32_1 = arith.constant 0 : i32
    return %c0_i32, %c0_i32_0 : i32, i32
  }
  func.func @transform_2(%arg0: i32) -> (i32, i32) {
    %c0_i32 = arith.constant 0 : i32
    %c0_i32_0 = arith.constant 0 : i32
    %c0_i32_1 = arith.constant 0 : i32
    return %c0_i32, %c0_i32_0 : i32, i32
  }
  func.func @transform_3(%arg0: i32) -> (i32, i32) {
    %c0_i32 = arith.constant 0 : i32
    %c0_i32_0 = arith.constant 0 : i32
    return %arg0, %c0_i32 : i32, i32
  }
}

module attributes {stable_mosaic.version = 11 : i64} {
  func.func @_ffn_res_ln_kernel(%arg0: i32, %arg1: memref<8x32xbf16, #tpu.memory_space<vmem>>, %arg2: memref<32x64xbf16, #tpu.memory_space<vmem>>, %arg3: memref<1x64xf32, #tpu.memory_space<vmem>>, %arg4: memref<64x32xbf16, #tpu.memory_space<vmem>>, %arg5: memref<1x32xf32, #tpu.memory_space<vmem>>, %arg6: memref<1x32xf32, #tpu.memory_space<vmem>>, %arg7: memref<1x32xf32, #tpu.memory_space<vmem>>, %arg8: memref<8x32xbf16, #tpu.memory_space<vmem>>) attributes {dimension_semantics = [#tpu.dimension_semantics<parallel>], iteration_bounds = array<i64: 3>, scalar_prefetch = 0 : i64, scratch_operands = 0 : i64, tpu.core_type = #tpu.core_type<tc>, window_params = [{transform_indices = @transform_0, window_bounds = array<i64: 8, 32>}, {pipeline_mode = #tpu.pipeline_mode<synchronous>, transform_indices = @transform_1, window_bounds = array<i64: 32, 64>}, {pipeline_mode = #tpu.pipeline_mode<synchronous>, transform_indices = @transform_2, window_bounds = array<i64: 1, 64>}, {pipeline_mode = #tpu.pipeline_mode<synchronous>, transform_indices = @transform_3, window_bounds = array<i64: 64, 32>}, {pipeline_mode = #tpu.pipeline_mode<synchronous>, transform_indices = @transform_4, window_bounds = array<i64: 1, 32>}, {pipeline_mode = #tpu.pipeline_mode<synchronous>, transform_indices = @transform_5, window_bounds = array<i64: 1, 32>}, {pipeline_mode = #tpu.pipeline_mode<synchronous>, transform_indices = @transform_6, window_bounds = array<i64: 1, 32>}, {transform_indices = @transform_7, window_bounds = array<i64: 8, 32>}]} {
    %c0 = arith.constant 0 : index
    %c0_0 = arith.constant 0 : index
    %0 = vector.load %arg1[%c0, %c0_0] : memref<8x32xbf16, #tpu.memory_space<vmem>>, vector<8x32xbf16>
    %c0_1 = arith.constant 0 : index
    %c0_2 = arith.constant 0 : index
    %1 = vector.load %arg2[%c0_1, %c0_2] : memref<32x64xbf16, #tpu.memory_space<vmem>>, vector<32x64xbf16>
    %cst = arith.constant dense<0.000000e+00> : vector<8x64xf32>
    %2 = tpu.matmul %0, %1, %cst {dimension_numbers = #tpu.dot_dimension_numbers<[1], [0], [0], [1], [0, 0, 1, 1], [], []>} : vector<8x32xbf16>, vector<32x64xbf16>, vector<8x64xf32> -> vector<8x64xf32>
    %c0_3 = arith.constant 0 : index
    %c0_4 = arith.constant 0 : index
    %3 = vector.load %arg3[%c0_3, %c0_4] : memref<1x64xf32, #tpu.memory_space<vmem>>, vector<1x64xf32>
    %4 = vector.broadcast %3 : vector<1x64xf32> to vector<8x64xf32>
    %5 = arith.addf %2, %4 : vector<8x64xf32>
    %cst_5 = arith.constant 5.000000e-01 : f32
    %6 = vector.broadcast %cst_5 : f32 to vector<8x64xf32>
    %7 = arith.mulf %6, %5 : vector<8x64xf32>
    %cst_6 = arith.constant 4.471500e-02 : f32
    %8 = vector.broadcast %cst_6 : f32 to vector<8x64xf32>
    %9 = arith.mulf %8, %5 : vector<8x64xf32>
    %10 = arith.mulf %9, %5 : vector<8x64xf32>
    %11 = arith.mulf %10, %5 : vector<8x64xf32>
    %12 = arith.addf %5, %11 : vector<8x64xf32>
    %cst_7 = arith.constant 0.797884583 : f32
    %13 = vector.broadcast %cst_7 : f32 to vector<8x64xf32>
    %14 = arith.mulf %13, %12 : vector<8x64xf32>
    %15 = math.tanh %14 : vector<8x64xf32>
    %cst_8 = arith.constant 1.000000e+00 : f32
    %16 = vector.broadcast %cst_8 : f32 to vector<8x64xf32>
    %17 = arith.addf %16, %15 : vector<8x64xf32>
    %18 = arith.mulf %7, %17 : vector<8x64xf32>
    %19 = arith.truncf %18 : vector<8x64xf32> to vector<8x64xbf16>
    %c0_9 = arith.constant 0 : index
    %c0_10 = arith.constant 0 : index
    %20 = vector.load %arg4[%c0_9, %c0_10] : memref<64x32xbf16, #tpu.memory_space<vmem>>, vector<64x32xbf16>
    %cst_11 = arith.constant dense<0.000000e+00> : vector<8x32xf32>
    %21 = tpu.matmul %19, %20, %cst_11 {dimension_numbers = #tpu.dot_dimension_numbers<[1], [0], [0], [1], [0, 0, 1, 1], [], []>} : vector<8x64xbf16>, vector<64x32xbf16>, vector<8x32xf32> -> vector<8x32xf32>
    %c0_12 = arith.constant 0 : index
    %c0_13 = arith.constant 0 : index
    %22 = vector.load %arg5[%c0_12, %c0_13] : memref<1x32xf32, #tpu.memory_space<vmem>>, vector<1x32xf32>
    %23 = vector.broadcast %22 : vector<1x32xf32> to vector<8x32xf32>
    %24 = arith.addf %21, %23 : vector<8x32xf32>
    %25 = arith.extf %0 : vector<8x32xbf16> to vector<8x32xf32>
    %26 = arith.addf %24, %25 : vector<8x32xf32>
    %cst_14 = arith.constant dense<0.000000e+00> : vector<8xf32>
    %27 = vector.multi_reduction <add>, %26, %cst_14 [1] : vector<8x32xf32> to vector<8xf32>
    %28 = vector.shape_cast %27 : vector<8xf32> to vector<8x1xf32>
    %cst_15 = arith.constant 3.200000e+01 : f32
    %29 = vector.broadcast %cst_15 : f32 to vector<8x1xf32>
    %30 = arith.divf %28, %29 : vector<8x1xf32>
    %31 = vector.broadcast %30 : vector<8x1xf32> to vector<8x32xf32>
    %32 = arith.subf %26, %31 : vector<8x32xf32>
    %33 = arith.mulf %32, %32 : vector<8x32xf32>
    %cst_16 = arith.constant dense<0.000000e+00> : vector<8xf32>
    %34 = vector.multi_reduction <add>, %33, %cst_16 [1] : vector<8x32xf32> to vector<8xf32>
    %35 = vector.shape_cast %34 : vector<8xf32> to vector<8x1xf32>
    %cst_17 = arith.constant 3.200000e+01 : f32
    %36 = vector.broadcast %cst_17 : f32 to vector<8x1xf32>
    %37 = arith.divf %35, %36 : vector<8x1xf32>
    %38 = vector.broadcast %30 : vector<8x1xf32> to vector<8x32xf32>
    %39 = arith.subf %26, %38 : vector<8x32xf32>
    %cst_18 = arith.constant 9.99999996E-13 : f32
    %40 = vector.broadcast %cst_18 : f32 to vector<8x1xf32>
    %41 = arith.addf %37, %40 : vector<8x1xf32>
    %42 = math.rsqrt %41 : vector<8x1xf32>
    %43 = vector.broadcast %42 : vector<8x1xf32> to vector<8x32xf32>
    %44 = arith.mulf %39, %43 : vector<8x32xf32>
    %c0_19 = arith.constant 0 : index
    %c0_20 = arith.constant 0 : index
    %45 = vector.load %arg6[%c0_19, %c0_20] : memref<1x32xf32, #tpu.memory_space<vmem>>, vector<1x32xf32>
    %46 = vector.broadcast %45 : vector<1x32xf32> to vector<8x32xf32>
    %47 = arith.mulf %44, %46 : vector<8x32xf32>
    %c0_21 = arith.constant 0 : index
    %c0_22 = arith.constant 0 : index
    %48 = vector.load %arg7[%c0_21, %c0_22] : memref<1x32xf32, #tpu.memory_space<vmem>>, vector<1x32xf32>
    %49 = vector.broadcast %48 : vector<1x32xf32> to vector<8x32xf32>
    %50 = arith.addf %47, %49 : vector<8x32xf32>
    %51 = arith.truncf %50 : vector<8x32xf32> to vector<8x32xbf16>
    %c0_23 = arith.constant 0 : index
    %c0_24 = arith.constant 0 : index
    %52 = vector.load %arg8[%c0_23, %c0_24] : memref<8x32xbf16, #tpu.memory_space<vmem>>, vector<8x32xbf16>
    tpu.vector_store %arg8[%c0_23, %c0_24], %51 {strides = array<i32>} : memref<8x32xbf16, #tpu.memory_space<vmem>>, vector<8x32xbf16>,
    return
  }
  func.func @transform_0(%arg0: i32) -> (i32, i32) {
    %c0_i32 = arith.constant 0 : i32
    %c0_i32_0 = arith.constant 0 : i32
    return %arg0, %c0_i32 : i32, i32
  }
  func.func @transform_1(%arg0: i32) -> (i32, i32) {
    %c0_i32 = arith.constant 0 : i32
    %c0_i32_0 = arith.constant 0 : i32
    %c0_i32_1 = arith.constant 0 : i32
    return %c0_i32, %c0_i32_0 : i32, i32
  }
  func.func @transform_2(%arg0: i32) -> (i32, i32) {
    %c0_i32 = arith.constant 0 : i32
    %c0_i32_0 = arith.constant 0 : i32
    %c0_i32_1 = arith.constant 0 : i32
    return %c0_i32, %c0_i32_0 : i32, i32
  }
  func.func @transform_3(%arg0: i32) -> (i32, i32) {
    %c0_i32 = arith.constant 0 : i32
    %c0_i32_0 = arith.constant 0 : i32
    %c0_i32_1 = arith.constant 0 : i32
    return %c0_i32, %c0_i32_0 : i32, i32
  }
  func.func @transform_4(%arg0: i32) -> (i32, i32) {
    %c0_i32 = arith.constant 0 : i32
    %c0_i32_0 = arith.constant 0 : i32
    %c0_i32_1 = arith.constant 0 : i32
    return %c0_i32, %c0_i32_0 : i32, i32
  }
  func.func @transform_5(%arg0: i32) -> (i32, i32) {
    %c0_i32 = arith.constant 0 : i32
    %c0_i32_0 = arith.constant 0 : i32
    %c0_i32_1 = arith.constant 0 : i32
    return %c0_i32, %c0_i32_0 : i32, i32
  }
  func.func @transform_6(%arg0: i32) -> (i32, i32) {
    %c0_i32 = arith.constant 0 : i32
    %c0_i32_0 = arith.constant 0 : i32
    %c0_i32_1 = arith.constant 0 : i32
    return %c0_i32, %c0_i32_0 : i32, i32
  }
  func.func @transform_7(%arg0: i32) -> (i32, i32) {
    %c0_i32 = arith.constant 0 : i32
    %c0_i32_0 = arith.constant 0 : i32
    return %arg0, %c0_i32 : i32, i32
  }
}

module attributes {stable_mosaic.version = 11 : i64} {
  func.func @_avg_pool_kernel(%arg0: i32, %arg1: memref<1x12x32xbf16, #tpu.memory_space<vmem>>, %arg2: memref<1x8x3xi32, #tpu.memory_space<vmem>>, %arg3: memref<1x8x32xf32, #tpu.memory_space<vmem>>) attributes {dimension_semantics = [#tpu.dimension_semantics<parallel>], iteration_bounds = array<i64: 2>, scalar_prefetch = 0 : i64, scratch_operands = 0 : i64, tpu.core_type = #tpu.core_type<tc>, window_params = [{transform_indices = @transform_0, window_bounds = array<i64: 1, 12, 32>}, {transform_indices = @transform_1, window_bounds = array<i64: 1, 8, 3>}, {transform_indices = @transform_2, window_bounds = array<i64: 1, 8, 32>}]} {
    %c0 = arith.constant 0 : index
    %c0_0 = arith.constant 0 : index
    %c0_1 = arith.constant 0 : index
    %0 = vector.load %arg1[%c0, %c0_0, %c0_1] : memref<1x12x32xbf16, #tpu.memory_space<vmem>>, vector<1x12x32xbf16>
    %1 = vector.shape_cast %0 : vector<1x12x32xbf16> to vector<12x32xbf16>
    %2 = arith.extf %1 : vector<12x32xbf16> to vector<12x32xf32>
    %c0_2 = arith.constant 0 : index
    %c0_3 = arith.constant 0 : index
    %c0_4 = arith.constant 0 : index
    %3 = vector.load %arg2[%c0_2, %c0_3, %c0_4] : memref<1x8x3xi32, #tpu.memory_space<vmem>>, vector<1x8x3xi32>
    %4 = vector.shape_cast %3 : vector<1x8x3xi32> to vector<8x3xi32>
    %5 = tpu.iota {dimensions = array<i32: 1>} : vector<8x12xi32>
    %cst = arith.constant 0.000000e+00 : f32
    %6 = vector.broadcast %cst : f32 to vector<8x12xf32>
    %7 = vector.extract_strided_slice %4 {offsets = [0, 0], sizes = [8, 1], strides = [1, 1]} : vector<8x3xi32> to vector<8x1xi32>
    %8 = vector.broadcast %7 : vector<8x1xi32> to vector<8x12xi32>
    %9 = arith.cmpi eq, %8, %5 : vector<8x12xi32>
    %c0_i32 = arith.constant 0 : i32
    %10 = vector.broadcast %c0_i32 : i32 to vector<8x1xi32>
    %11 = arith.cmpi ne, %7, %10 : vector<8x1xi32>
    %12 = vector.broadcast %11 : vector<8x1xi1> to vector<8x12xi1>
    %13 = arith.andi %9, %12 : vector<8x12xi1>
    %cst_5 = arith.constant 1.000000e+00 : f32
    %cst_6 = arith.constant 0.000000e+00 : f32
    %14 = vector.broadcast %cst_5 : f32 to vector<8x12xf32>
    %15 = vector.broadcast %cst_6 : f32 to vector<8x12xf32>
    %16 = arith.select %13, %14, %15 : vector<8x12xi1>, vector<8x12xf32>
    %17 = arith.addf %6, %16 : vector<8x12xf32>
    %18 = vector.extract_strided_slice %4 {offsets = [0, 1], sizes = [8, 1], strides = [1, 1]} : vector<8x3xi32> to vector<8x1xi32>
    %19 = vector.broadcast %18 : vector<8x1xi32> to vector<8x12xi32>
    %20 = arith.cmpi eq, %19, %5 : vector<8x12xi32>
    %c0_i32_7 = arith.constant 0 : i32
    %21 = vector.broadcast %c0_i32_7 : i32 to vector<8x1xi32>
    %22 = arith.cmpi ne, %18, %21 : vector<8x1xi32>
    %23 = vector.broadcast %22 : vector<8x1xi1> to vector<8x12xi1>
    %24 = arith.andi %20, %23 : vector<8x12xi1>
    %cst_8 = arith.constant 1.000000e+00 : f32
    %cst_9 = arith.constant 0.000000e+00 : f32
    %25 = vector.broadcast %cst_8 : f32 to vector<8x12xf32>
    %26 = vector.broadcast %cst_9 : f32 to vector<8x12xf32>
    %27 = arith.select %24, %25, %26 : vector<8x12xi1>, vector<8x12xf32>
    %28 = arith.addf %17, %27 : vector<8x12xf32>
    %29 = vector.extract_strided_slice %4 {offsets = [0, 2], sizes = [8, 1], strides = [1, 1]} : vector<8x3xi32> to vector<8x1xi32>
    %30 = vector.broadcast %29 : vector<8x1xi32> to vector<8x12xi32>
    %31 = arith.cmpi eq, %30, %5 : vector<8x12xi32>
    %c0_i32_10 = arith.constant 0 : i32
    %32 = vector.broadcast %c0_i32_10 : i32 to vector<8x1xi32>
    %33 = arith.cmpi ne, %29, %32 : vector<8x1xi32>
    %34 = vector.broadcast %33 : vector<8x1xi1> to vector<8x12xi1>
    %35 = arith.andi %31, %34 : vector<8x12xi1>
    %cst_11 = arith.constant 1.000000e+00 : f32
    %cst_12 = arith.constant 0.000000e+00 : f32
    %36 = vector.broadcast %cst_11 : f32 to vector<8x12xf32>
    %37 = vector.broadcast %cst_12 : f32 to vector<8x12xf32>
    %38 = arith.select %35, %36, %37 : vector<8x12xi1>, vector<8x12xf32>
    %39 = arith.addf %28, %38 : vector<8x12xf32>
    %cst_13 = arith.constant dense<0.000000e+00> : vector<8x32xf32>
    %40 = tpu.matmul %39, %2, %cst_13 {dimension_numbers = #tpu.dot_dimension_numbers<[1], [0], [0], [1], [0, 0, 1, 1], [], []>} : vector<8x12xf32>, vector<12x32xf32>, vector<8x32xf32> -> vector<8x32xf32>
    %cst_14 = arith.constant dense<0.000000e+00> : vector<8xf32>
    %41 = vector.multi_reduction <add>, %39, %cst_14 [1] : vector<8x12xf32> to vector<8xf32>
    %42 = vector.shape_cast %41 : vector<8xf32> to vector<8x1xf32>
    %cst_15 = arith.constant 0.000000e+00 : f32
    %43 = vector.broadcast %cst_15 : f32 to vector<8x1xf32>
    %44 = arith.cmpf oeq, %42, %43 : vector<8x1xf32>
    %cst_16 = arith.constant 1.000000e+00 : f32
    %cst_17 = arith.constant 0.000000e+00 : f32
    %45 = vector.broadcast %cst_16 : f32 to vector<8x1xf32>
    %46 = vector.broadcast %cst_17 : f32 to vector<8x1xf32>
    %47 = arith.select %44, %45, %46 : vector<8x1xi1>, vector<8x1xf32>
    %48 = arith.addf %42, %47 : vector<8x1xf32>
    %49 = vector.broadcast %48 : vector<8x1xf32> to vector<8x32xf32>
    %50 = arith.divf %40, %49 : vector<8x32xf32>
    %c0_18 = arith.constant 0 : index
    %c0_19 = arith.constant 0 : index
    %c0_20 = arith.constant 0 : index
    %51 = vector.load %arg3[%c0_18, %c0_19, %c0_20] : memref<1x8x32xf32, #tpu.memory_space<vmem>>, vector<1x8x32xf32>
    %52 = vector.shape_cast %51 : vector<1x8x32xf32> to vector<8x32xf32>
    %53 = vector.shape_cast %50 : vector<8x32xf32> to vector<1x8x32xf32>
    tpu.vector_store %arg3[%c0_18, %c0_19, %c0_20], %53 {strides = array<i32>} : memref<1x8x32xf32, #tpu.memory_space<vmem>>, vector<1x8x32xf32>,
    return
  }
  func.func @transform_0(%arg0: i32) -> (i32, i32, i32) {
    %c0_i32 = arith.constant 0 : i32
    %c0_i32_0 = arith.constant 0 : i32
    %c0_i32_1 = arith.constant 0 : i32
    return %arg0, %c0_i32, %c0_i32_0 : i32, i32, i32
  }
  func.func @transform_1(%arg0: i32) -> (i32, i32, i32) {
    %c0_i32 = arith.constant 0 : i32
    %c0_i32_0 = arith.constant 0 : i32
    %c0_i32_1 = arith.constant 0 : i32
    return %arg0, %c0_i32, %c0_i32_0 : i32, i32, i32
  }
  func.func @transform_2(%arg0: i32) -> (i32, i32, i32) {
    %c0_i32 = arith.constant 0 : i32
    %c0_i32_0 = arith.constant 0 : i32
    %c0_i32_1 = arith.constant 0 : i32
    return %arg0, %c0_i32, %c0_i32_0 : i32, i32, i32
  }
}

</mosaic_0001>

<bundles_post_ra>
// kernel: bert_embedder_forward.13
= control target key start
LH: loop header
LB: loop body
LE: loop exit
PB: predicated region body
PF: predicated region fallthrough
CT: control target
= control target key end

     0   :  { %s520_s21 = smov 0   ;;  %s563_s0 = inlined_call_operand.vmem [shape: bf16[24,32], index: 0, kind: input, shape index: {}]   ;;  %s564_s1 = inlined_call_operand.vmem [shape: bf16[24,32], index: 1, kind: input, shape index: {}]   ;;  %s565_s2 = inlined_call_operand.vmem [shape: bf16[32,32], index: 2, kind: input, shape index: {}]   ;;  %s566_s3 = inlined_call_operand.vmem [shape: f32[1,32], index: 3, kind: input, shape index: {}]   ;;  %s567_s4 = inlined_call_operand.vmem [shape: f32[1,32], index: 4, kind: input, shape index: {}]   ;;  %s568_s5 = inlined_call_operand.vmem [shape: f32[1,32], index: 5, kind: input, shape index: {}]   ;;  %s569_s6 = inlined_call_operand.vmem [shape: bf16[24,32], index: 6, kind: output, shape index: {}]  }
   0x1 LB: > { %s434_s22 = sadd.s32 4294967295, %s481_s21   ;;  %p438_p0 = scmp.ge.s32.totalorder %s481_s21, 1  ;;  %s481_s21 = sphi %s520_s21, %s16_s21  }
   0x2   : > { %p220_p1 = scmp.lt.s32.totalorder %s481_s21, 4 }
   0x4   : > { %p221_p2 = pnand %p438_p0, %p220_p1 }
   0x5   : > { %v471_v0 = vld [vmem:[%s565_s2] sm:$0xff] (!%p221_p2)   ;;  %v483_v1 = vmov (!%p221_p2), 0.0   ;;  %v472_v2 = vld [vmem:[%s565_s2 + $0x8] sm:$0xff] (!%p221_p2)   ;;  %vm484_vm0 = vmmov (!%p221_p2), 0   ;;  %p252_p3 = scmp.lt.s32.totalorder (!%p221_p2), %s434_s22, 2  ;;  %vm289_vm1 = vcmask (!%p221_p2), 261120  }
   0x6   : > { %224 = sbr.rel (%p221_p2) target bundleno = 549 (0x225), region = 44  ;;  %453 = vmatprep.subr.bf16.mxu0 (!%p221_p2), %v483_v1  ;;  %457 = vmatprep.mubr.msk.bf16.mxu0 (!%p221_p2), %vm484_vm0, %v483_v1  ;;  %v442_v5 = vld [vmem:[%s566_s3] ss:$0 sm:$0xff] (!%p221_p2)  ;;  %vm367_vm2 = vcmask (!%p221_p2), 257024  }
   0x7   : > { %454 = vmatpush3.bf16.msra.mxu0 (!%p221_p2), %v471_v0  ;;  %v446_v23 = vld [vmem:[%s567_s4] ss:$0 sm:$0xff] (!%p221_p2) }
   0x8   : > { %455 = vmatprep.subr.bf16.mxu0 (!%p221_p2), %v483_v1  ;;  %v447_v25 = vld [vmem:[%s568_s5] ss:$0 sm:$0xff] (!%p221_p2) }
   0xb   : > { %456 = vmatpush3.bf16.msra.mxu0 (!%p221_p2), %v472_v2 }
   0xd   : > { %s571_s22 = smov (!%p252_p3, %s434_s22), 2 }
   0xe   : > { %s534_s27 = sshll.u32 %s571_s22, 2 }
   0xf   : > { %s255_s30 = scalar_lea.vmem %s563_s0, %s534_s27  ;;  %s259_s9 = scalar_lea.vmem %s564_s1, %s534_s27 }
  0x10   : > { %v265_v3 = vld [vmem:[%s255_s30] sm:$0xf]  ;;  %s263_s18 = scalar_lea.vmem %s569_s6, %s534_s27 }
  0x11   : > { %458 = vmatmul.mubr.msk.bf16.vlgmr.msra.gmra.mrb[0].mxu0 %vm289_vm1, %v265_v3  ;;  %v333_v4 = vld [vmem:[%s259_s9] sm:$0xf] }
  0x12   : > { %v334_v6 = vunpack.c.l.bf16 %v333_v4 }
  0xe4   : > { %v327_v7 = vpop.f32.mrb[0].mxu0 }
  0xe5   : > { %v328_v8 = vadd.f32 %v442_v5, %v327_v7  ;;  %v459_v9 = vpop.f32.mrb[1].mxu0 }
  0xe6   : > { %v330_v10 = vpop.f32.mrb[2].mxu0 }
  0xe7   : > { %v460_v11 = vpop.f32.mrb[3].mxu0  ;;  %v335_v12 = vadd.f32 %v334_v6, %v328_v8 }
  0xe9   : > { %v336_v13 = vsel %vm289_vm1, %v335_v12, 0.0 }
  0xea   : > { %337 = vadd.xlane.f32.xlu0 %v336_v13 }
 0x177   : > { %v338_v14 = vpop.xlane.xlu0 %337 }
 0x178   : > { %v340_v15 = vmul.f32 0.03125, %v338_v14 }
 0x17a   : > { %v341_v16 = vsub.f32 %v335_v12, %v340_v15 }
 0x17c   : > { %v342_v17 = vmul.f32 %v341_v16, %v341_v16 }
 0x17e   : > { %v343_v18 = vsel %vm289_vm1, %v342_v17, 0.0 }
 0x17f   : > { %344 = vadd.xlane.f32.xlu0 %v343_v18 }
 0x20c   : > { %v345_v19 = vpop.xlane.xlu0 %344 }
 0x20d   : > { %v346_v20 = vmul.f32 0.03125, %v345_v19 }
 0x20f   : > { %v347_v21 = vadd.f32 1e-12, %v346_v20 }
 0x211   : > { %473 = vrsqrt.f32 %v347_v21 }
 0x21b   : > { %v474_v22 = vpop.eup %473 }
 0x21c   : > { %v349_v24 = vmul.f32 %v474_v22, %v341_v16 }
 0x21e   : > { %v357_v26 = vmul.f32 %v446_v23, %v349_v24 }
 0x220   : > { %v365_v27 = vadd.f32 %v447_v25, %v357_v26 }
 0x222   : > { %v366_v28 = vpack.c.bf16 %v365_v27, %v365_v27 }
 0x224   : > { %368 = vst.msk [vmem:[%s263_s18] sm:$0xf] %vm367_vm2, %v366_v28 }
 0x225 PF: > { %s16_s21 = sadd.s32 1, %s481_s21  }
 0x226   : > { %p13_p4 = scmp.ge.s32.totalorder %s16_s21, 5  }
 0x228   :  { %15 = sbr.rel (!%p13_p4) target bundleno = 1 (0x1), region = 77 }

// kernel: bert_embedder_forward.10
= control target key start
LH: loop header
LB: loop body
LE: loop exit
PB: predicated region body
PF: predicated region fallthrough
CT: control target
= control target key end

     0   :  { %s303_s12 = smov 0   ;;  %s326_s0 = inlined_call_operand.vmem [shape: f32[24,32], index: 0, kind: input, shape index: {}]   ;;  %s327_s1 = inlined_call_operand.vmem [shape: f32[1,32], index: 1, kind: input, shape index: {}]   ;;  %s328_s2 = inlined_call_operand.vmem [shape: f32[1,32], index: 2, kind: input, shape index: {}]   ;;  %s329_s3 = inlined_call_operand.vmem [shape: bf16[24,32], index: 3, kind: output, shape index: {}]  }
   0x1 LB: > { %s254_s13 = sadd.s32 4294967295, %s281_s12   ;;  %p258_p0 = scmp.ge.s32.totalorder %s281_s12, 1  ;;  %s281_s12 = sphi %s303_s12, %s13_s12  }
   0x2   : > { %p136_p1 = scmp.lt.s32.totalorder %s281_s12, 4 }
   0x4   : > { %p137_p2 = pnand %p258_p0, %p136_p1 }
   0x5   : > { %p158_p3 = scmp.lt.s32.totalorder (!%p137_p2), %s254_s13, 2  ;;  %vm167_vm0 = vcmask (!%p137_p2), 261120   ;;  %v261_v11 = vld [vmem:[%s327_s1] ss:$0 sm:$0xff] (!%p137_p2)  ;;  %vm199_vm1 = vcmask (!%p137_p2), 257024  }
   0x6   : > { %140 = sbr.rel (%p137_p2) target bundleno = 333 (0x14d), region = 32  ;;  %v262_v13 = vld [vmem:[%s328_s2] ss:$0 sm:$0xff] (!%p137_p2) }
   0xd   : > { %s331_s13 = smov (!%p158_p3, %s254_s13), 2 }
   0xe   : > { %s259_s14 = sshll.u32 %s331_s13, 3  ;;  %s260_s22 = sshll.u32 %s331_s13, 2 }
   0xf   : > { %s161_s17 = scalar_lea.vmem %s326_s0, %s259_s14  ;;  %s165_s25 = scalar_lea.vmem %s329_s3, %s260_s22 }
  0x10   : > { %v166_v0 = vld [vmem:[%s161_s17] sm:$0xff] }
  0x11   : > { %v168_v1 = vsel %vm167_vm0, %v166_v0, 0.0 }
  0x12   : > { %169 = vadd.xlane.f32.xlu0 %v168_v1 }
  0x9f   : > { %v170_v2 = vpop.xlane.xlu0 %169 }
  0xa0   : > { %v172_v3 = vmul.f32 0.03125, %v170_v2 }
  0xa2   : > { %v173_v4 = vsub.f32 %v166_v0, %v172_v3 }
  0xa4   : > { %v174_v5 = vmul.f32 %v173_v4, %v173_v4 }
  0xa6   : > { %v175_v6 = vsel %vm167_vm0, %v174_v5, 0.0 }
  0xa7   : > { %176 = vadd.xlane.f32.xlu0 %v175_v6 }
 0x134   : > { %v177_v7 = vpop.xlane.xlu0 %176 }
 0x135   : > { %v178_v8 = vmul.f32 0.03125, %v177_v7 }
 0x137   : > { %v179_v9 = vadd.f32 1e-12, %v178_v8 }
 0x139   : > { %273 = vrsqrt.f32 %v179_v9 }
 0x143   : > { %v274_v10 = vpop.eup %273 }
 0x144   : > { %v181_v12 = vmul.f32 %v274_v10, %v173_v4 }
 0x146   : > { %v189_v14 = vmul.f32 %v261_v11, %v181_v12 }
 0x148   : > { %v197_v15 = vadd.f32 %v262_v13, %v189_v14 }
 0x14a   : > { %v198_v16 = vpack.c.bf16 %v197_v15, %v197_v15 }
 0x14c   : > { %200 = vst.msk [vmem:[%s165_s25] sm:$0xf] %vm199_vm1, %v198_v16 }
 0x14d PF: > { %s13_s12 = sadd.s32 1, %s281_s12  }
 0x14e   : > { %p10_p4 = scmp.ge.s32.totalorder %s13_s12, 5  }
 0x150   :  { %12 = sbr.rel (!%p10_p4) target bundleno = 1 (0x1), region = 62 }

// kernel: bert_embedder_forward.11
= control target key start
LH: loop header
LB: loop body
LE: loop exit
PB: predicated region body
PF: predicated region fallthrough
CT: control target
= control target key end

     0   :  { %s357_s12 = smov 0   ;;  %s383_s0 = inlined_call_operand.vmem [shape: bf16[24,32], index: 0, kind: input, shape index: {}]   ;;  %s384_s1 = inlined_call_operand.vmem [shape: bf16[32,96], index: 1, kind: input, shape index: {}]   ;;  %s385_s2 = inlined_call_operand.vmem [shape: f32[1,96], index: 2, kind: input, shape index: {}]   ;;  %s386_s3 = inlined_call_operand.vmem [shape: bf16[24,96], index: 3, kind: output, shape index: {}]  }
   0x1 LB: > { %s291_s13 = sadd.s32 4294967295, %s333_s12   ;;  %p295_p0 = scmp.ge.s32.totalorder %s333_s12, 1  ;;  %s333_s12 = sphi %s357_s12, %s13_s12  }
   0x2   : > { %p136_p1 = scmp.lt.s32.totalorder %s333_s12, 4 }
   0x4   : > { %p137_p2 = pnand %p295_p0, %p136_p1 }
   0x5   : > { %v325_v0 = vld [vmem:[%s384_s1] sm:$0xff] (!%p137_p2)   ;;  %v335_v1 = vmov (!%p137_p2), 0.0   ;;  %v326_v2 = vld [vmem:[%s384_s1 + $0x8] sm:$0xff] (!%p137_p2)   ;;  %vm336_vm0 = vmmov (!%p137_p2), 0   ;;  %p158_p3 = scmp.lt.s32.totalorder (!%p137_p2), %s291_s13, 2  ;;  %vm191_vm1 = vcmask (!%p137_p2), 261120  }
   0x6   : > { %140 = sbr.rel (%p137_p2) target bundleno = 234 (0xea), region = 32  ;;  %307 = vmatprep.subr.bf16.mxu0 (!%p137_p2), %v335_v1  ;;  %311 = vmatprep.mubr.msk.bf16.mxu0 (!%p137_p2), %vm336_vm0, %v335_v1  ;;  %v298_v4 = vld [vmem:[%s385_s2] ss:$0 sm:$0xff] (!%p137_p2)  ;;  %vm236_vm2 = vcmask (!%p137_p2), 781312  }
   0x7   : > { %308 = vmatpush3.bf16.msra.mxu0 (!%p137_p2), %v325_v0 }
   0x8   : > { %309 = vmatprep.subr.bf16.mxu0 (!%p137_p2), %v335_v1 }
   0xb   : > { %310 = vmatpush3.bf16.msra.mxu0 (!%p137_p2), %v326_v2 }
   0xd   : > { %s388_s13 = smov (!%p158_p3, %s291_s13), 2 }
   0xe   : > { %s296_s18 = sshll.u32 %s388_s13, 2 }
   0xf   : > { %s161_s21 = scalar_lea.vmem %s383_s0, %s296_s18  ;;  %s165_s26 = scalar_lea.vmem %s386_s3, %s296_s18 }
  0x10   : > { %v167_v3 = vld [vmem:[%s161_s21] sm:$0xf] }
  0x11   : > { %312 = vmatmul.mubr.msk.bf16.vlgmr.msra.gmra.mrb[0].mxu0 %vm191_vm1, %v167_v3 }
  0xe4   : > { %v229_v5 = vpop.f32.mrb[0].mxu0 }
  0xe5   : > { %v230_v6 = vadd.f32 %v298_v4, %v229_v5  ;;  %v313_v7 = vpop.f32.mrb[1].mxu0 }
  0xe6   : > { %v232_v8 = vpop.f32.mrb[2].mxu0 }
  0xe7   : > { %v235_v9 = vpack.c.bf16 %v230_v6, %v230_v6  ;;  %v314_v10 = vpop.f32.mrb[3].mxu0 }
  0xe9   : > { %237 = vst.msk [vmem:[%s165_s26] sm:$0xf] %vm236_vm2, %v235_v9 }
  0xea PF: > { %s13_s12 = sadd.s32 1, %s333_s12  }
  0xeb   : > { %p10_p4 = scmp.ge.s32.totalorder %s13_s12, 5  }
  0xed   :  { %12 = sbr.rel (!%p10_p4) target bundleno = 1 (0x1), region = 62 }

// kernel: bert_embedder_forward.12
= control target key start
LH: loop header
LB: loop body
LE: loop exit
PB: predicated region body
PF: predicated region fallthrough
CT: control target
= control target key end

     0   :  { %s639_s9 = smov 0   ;;  %s711_s0 = inlined_call_operand.vmem [shape: bf16[2,12,96], index: 0, kind: input, shape index: {}]   ;;  %s712_s1 = inlined_call_operand.vmem [shape: f32[2,1,12], index: 1, kind: input, shape index: {}]   ;;  %s713_s2 = inlined_call_operand.vmem [shape: bf16[2,12,32], index: 2, kind: output, shape index: {}]  }
   0x1 LB: > { %s515_s10 = sadd.s32 4294967295, %s614_s9   ;;  %p519_p0 = scmp.ge.s32.totalorder %s614_s9, 1  ;;  %s614_s9 = sphi %s639_s9, %s12_s9  }
   0x2   : > { %p120_p1 = scmp.lt.s32.totalorder %s614_s9, 3 }
   0x4   : > { %p121_p2 = pnand %p519_p0, %p120_p1 }
   0x5   : > { %p145_p3 = scmp.lt.s32.totalorder (!%p121_p2), %s515_s10, 1  ;;  %v616_v0 = vmov (!%p121_p2), 0.0   ;;  %vm617_vm0 = vmmov (!%p121_p2), 0   ;;  %s618_s15 = smov (!%p121_p2), 96   ;;  %vm169_vm1 = vcmask (!%p121_p2), 130048   ;;  %vm227_vm2 = vcmask (!%p121_p2), 97280  }
   0x6   : > { %124 = sbr.rel (%p121_p2) target bundleno = 1558 (0x616), region = 28  ;;  %546 = vmatprep.subr.bf16.mxu0 (!%p121_p2), %v616_v0  ;;  %548 = vmatprep.mubr.msk.bf16.mxu0 (!%p121_p2), %vm617_vm0, %v616_v0  ;;  %vm231_vm3 = vcmask (!%p121_p2), 93184   ;;  %s619_s19 = smov (!%p121_p2), 64   ;;  %vm257_vm4 = vcmask (!%p121_p2), 1045504   ;;  %vm447_vm5 = vcmask (!%p121_p2), 257024   ;;  %vm449_vm6 = vcmask (!%p121_p2), 254976  }
   0x7   : > { %552 = vmatprep.subr.bf16.mxu1 (!%p121_p2), %v616_v0  ;;  %554 = vmatprep.mubr.msk.bf16.mxu1 (!%p121_p2), %vm617_vm0, %v616_v0  ;;  %s620_s20 = smov (!%p121_p2), 80   ;;  %s621_s21 = smov (!%p121_p2), 112  }
   0x8   : > { %s622_s22 = smov (!%p121_p2), 48   ;;  %s623_s23 = smov (!%p121_p2), 16  }
   0xd   : > { %s715_s10 = smov (!%p145_p3, %s515_s10), 1 }
   0xe   : > { %s534_s11 = sshll.u32 %s715_s10, 3  ;;  %s152_s18 = scalar_lea.vmem %s712_s1, %s715_s10 }
   0xf   : > { %s149_s14 = scalar_lea.vmem %s711_s0, %s534_s11  ;;  %v674_v5 = vld [vmem:[%s152_s18] ss:$0 sm:$0xff]  ;;  %s157_s26 = scalar_lea.vmem %s713_s2, %s534_s11 }
  0x10   : > { %v661_v1 = vld [vmem:[%s149_s14] sm:$0x3f]  }
  0x11   : > { %167 = vrot.lane.b32.xlu0 %v661_v1, %s618_s15 }
  0x83   : > { %v168_v2 = vpop.permute.xlu0 %167 }
  0x84   : > { %v174_v3 = vsel %vm169_vm1, %v168_v2, 0 }
  0x85   : > { %547 = vmatpush3.bf16.xpose.msra.mxu0 %v174_v3 }
  0x86   : > { %564 = vmatprep.subr.bf16.mxu0 %v616_v0 }
  0x8c   : > { %549 = vmatmul.mubr.msk.bf16.vlgmr.msra.gmra.mrb[0].mxu0 %vm169_vm1, %v661_v1 }
  0x8d   : > { %566 = vmatprep.mubr.msk.bf16.mxu0 %vm617_vm0, %v616_v0 }
 0x15f   : > { %v210_v4 = vpop.f32.mrb[0].mxu0 }
 0x160   : > { %v217_v6 = vmul.f32 0.25, %v210_v4  ;;  %v550_v7 = vpop.f32.mrb[1].mxu0 }
 0x161   : > { %v213_v8 = vpop.f32.mrb[2].mxu0 }
 0x162   : > { %v218_v9 = vmul.f32 0.25, %v213_v8  ;;  %v551_v10 = vpop.f32.mrb[3].mxu0  ;;  %v225_v11 = vadd.f32 %v674_v5, %v217_v6 }
 0x164   : > { %v228_v12 = vsel %vm227_vm2, %v225_v11, -inf  ;;  %v226_v13 = vadd.f32 %v674_v5, %v218_v9 }
 0x165   : > { %229 = vmax.xlane.f32.xlu0 %v228_v12 }
 0x166   : > { %v232_v14 = vsel %vm231_vm3, %v226_v13, -inf }
 0x167   : > { %233 = vmax.xlane.f32.xlu1 %v232_v14 }
 0x178   : > { %252 = vrot.lane.b32.xlu1 %v661_v1, %s619_s19 }
 0x1f2   : > { %v230_v15 = vpop.xlane.xlu0 %229 }
 0x1f3   : > { %v235_v16 = vsub.f32 %v225_v11, %v230_v15 }
 0x1f4   : > { %v234_v17 = vpop.xlane.xlu1 %233 }
 0x1f5   : > { %v237_v18 = vmul.f32 1.442695, %v235_v16  ;;  %v236_v19 = vsub.f32 %v226_v13, %v234_v17 }
 0x1f7   : > { %592 = vpow2.f32 %v237_v18  ;;  %v239_v20 = vmul.f32 1.442695, %v236_v19 }
 0x1f8   : > { %v253_v21 = vpop.permute.xlu1 %252 }
 0x1f9   : > { %594 = vpow2.f32 %v239_v20  ;;  %v259_v22 = vsel %vm257_vm4, %v253_v21, 0 }
 0x1fa   : > { %553 = vmatpush3.bf16.msra.mxu1 %v259_v22 }
 0x1fb   : > { %558 = vmatprep.subr.bf16.mxu1 %v616_v0 }
 0x201   : > { %v593_v23 = vpop.eup %592 }
 0x202   : > { %v241_v24 = vsel %vm227_vm2, %v593_v23, 0.0 }
 0x203   : > { %v595_v25 = vpop.eup %594  ;;  %242 = vadd.xlane.f32.xlu1 %v241_v24 }
 0x204   : > { %v244_v26 = vsel %vm231_vm3, %v595_v25, 0.0 }
 0x207   : > { %245 = vadd.xlane.f32.xlu1 %v244_v26 }
 0x218   : > { %304 = vrot.lane.b32.xlu1 %v661_v1, %s620_s20 }
 0x21c   : > { %302 = vrot.lane.b32.xlu1 %v661_v1, %s621_s21 }
 0x290   : > { %v243_v27 = vpop.xlane.xlu1 %242 }
 0x291   : > { %596 = vrcp.f32 %v243_v27 }
 0x294   : > { %v246_v28 = vpop.xlane.xlu1 %245 }
 0x295   : > { %598 = vrcp.f32 %v246_v28 }
 0x298   : > { %v305_v31 = vpop.permute.xlu1 %304 }
 0x299   : > { %v310_v34 = vsel %vm169_vm1, %v305_v31, 0 }
 0x29b   : > { %v597_v29 = vpop.eup %596 }
 0x29c   : > { %v249_v32 = vmul.f32 %v597_v29, %v593_v23  ;;  %v303_v36 = vpop.permute.xlu1 %302 }
 0x29f   : > { %v599_v30 = vpop.eup %598 }
 0x2a0   : > { %v250_v33 = vmul.f32 %v599_v30, %v595_v25 }
 0x2a2   : > { %v251_v35 = vpack.c.bf16 %v250_v33, %v249_v32 }
 0x2a4   : > { %555 = vmatmul.mubr.msk.bf16.vlgmr.msra.gmra.mrb[0].mxu1 %vm227_vm2, %v251_v35 }
 0x2a5   : > { %559 = vmatpush3.bf16.xpose.msra.mxu1 %v310_v34  ;;  %560 = vmatprep.mubr.msk.bf16.mxu1 %vm617_vm0, %v616_v0 }
 0x2ac   : > { %561 = vmatmul.mubr.msk.bf16.vlgmr.msra.gmra.mrb[4].mxu1 %vm169_vm1, %v303_v36 }
 0x377   : > { %v295_v37 = vpop.f32.mrb[0].mxu1 }
 0x378   : > { %v556_v38 = vpop.f32.mrb[1].mxu1 }
 0x379   : > { %v298_v39 = vpop.f32.mrb[2].mxu1 }
 0x37a   : > { %v557_v40 = vpop.f32.mrb[3].mxu1 }
 0x37f   : > { %v346_v41 = vpop.f32.mrb[4].mxu1 }
 0x380   : > { %v353_v42 = vmul.f32 0.25, %v346_v41  ;;  %v562_v43 = vpop.f32.mrb[5].mxu1 }
 0x381   : > { %v349_v44 = vpop.f32.mrb[6].mxu1 }
 0x382   : > { %v354_v45 = vmul.f32 0.25, %v349_v44  ;;  %v563_v46 = vpop.f32.mrb[7].mxu1  ;;  %v355_v47 = vadd.f32 %v674_v5, %v353_v42 }
 0x384   : > { %v357_v48 = vsel %vm227_vm2, %v355_v47, -inf  ;;  %v356_v49 = vadd.f32 %v674_v5, %v354_v45 }
 0x385   : > { %358 = vmax.xlane.f32.xlu0 %v357_v48 }
 0x386   : > { %v360_v50 = vsel %vm231_vm3, %v356_v49, -inf }
 0x387   : > { %361 = vmax.xlane.f32.xlu1 %v360_v50 }
 0x412   : > { %v359_v51 = vpop.xlane.xlu0 %358 }
 0x413   : > { %v363_v52 = vsub.f32 %v355_v47, %v359_v51 }
 0x414   : > { %v362_v53 = vpop.xlane.xlu1 %361 }
 0x415   : > { %v365_v54 = vmul.f32 1.442695, %v363_v52  ;;  %v364_v55 = vsub.f32 %v356_v49, %v362_v53 }
 0x417   : > { %600 = vpow2.f32 %v365_v54  ;;  %v367_v56 = vmul.f32 1.442695, %v364_v55 }
 0x419   : > { %602 = vpow2.f32 %v367_v56 }
 0x421   : > { %v601_v57 = vpop.eup %600 }
 0x422   : > { %v369_v58 = vsel %vm227_vm2, %v601_v57, 0.0 }
 0x423   : > { %v603_v59 = vpop.eup %602  ;;  %370 = vadd.xlane.f32.xlu0 %v369_v58 }
 0x424   : > { %v372_v60 = vsel %vm231_vm3, %v603_v59, 0.0 }
 0x427   : > { %373 = vadd.xlane.f32.xlu0 %v372_v60 }
 0x43d   : > { %380 = vrot.lane.b32.xlu0 %v661_v1, %s622_s22 }
 0x4b0   : > { %v371_v61 = vpop.xlane.xlu0 %370 }
 0x4b1   : > { %604 = vrcp.f32 %v371_v61 }
 0x4b4   : > { %v374_v62 = vpop.xlane.xlu0 %373 }
 0x4b5   : > { %606 = vrcp.f32 %v374_v62 }
 0x4b8   : > { %v381_v63 = vpop.permute.xlu0 %380 }
 0x4b9   : > { %v386_v0 = vsel %vm257_vm4, %v381_v63, 0 }
 0x4ba   : > { %565 = vmatpush3.bf16.msra.mxu0 %v386_v0 }
 0x4bb   : > { %v605_v2 = vpop.eup %604 }
 0x4bc   : > { %v377_v4 = vmul.f32 %v605_v2, %v601_v57 }
 0x4bf   : > { %v607_v3 = vpop.eup %606 }
 0x4c0   : > { %v378_v5 = vmul.f32 %v607_v3, %v603_v59 }
 0x4c2   : > { %v379_v6 = vpack.c.bf16 %v378_v5, %v377_v4 }
 0x4c4   : > { %567 = vmatmul.mubr.msk.bf16.vlgmr.msra.gmra.mrb[4].mxu0 %vm227_vm2, %v379_v6 }
 0x597   : > { %v422_v7 = vpop.f32.mrb[4].mxu0 }
 0x598   : > { %v568_v8 = vpop.f32.mrb[5].mxu0 }
 0x599   : > { %v425_v9 = vpop.f32.mrb[6].mxu0 }
 0x59a   : > { %v586_v1 = vpack.i.bf16 %v425_v9, %v422_v7  ;;  %v569_v10 = vpop.f32.mrb[7].mxu0 }
 0x59c   : > { %587 = vrot.lane.b32.xlu0 %v586_v1, %s623_s23 }
 0x60e   : > { %v588_v11 = vpop.permute.xlu0 %587 }
 0x60f   : > { %v590_v12 = vunpack.i.h.bf16 %v588_v11  ;;  %v589_v13 = vunpack.i.l.bf16 %v588_v11 }
 0x611   : > { %v438_v14 = vsel %vm169_vm1, %v298_v39, %v590_v12  ;;  %v437_v15 = vsel %vm169_vm1, %v295_v37, %v589_v13 }
 0x612   : > { %v537_v16 = vpack.c.bf16 %v438_v14, %v438_v14  ;;  %v536_v17 = vpack.c.bf16 %v437_v15, %v437_v15 }
 0x614   : > { %450 = vst.msk [vmem:[%s157_s26 + $0x4] sm:$0x3] %vm449_vm6, %v537_v16 }
 0x615   : > { %448 = vst.msk [vmem:[%s157_s26] sm:$0xf] %vm447_vm5, %v536_v17 }
 0x616 PF: > { %s12_s9 = sadd.s32 1, %s614_s9  }
 0x617   : > { %p9_p4 = scmp.ge.s32.totalorder %s12_s9, 4  }
 0x619   :  { %11 = sbr.rel (!%p9_p4) target bundleno = 1 (0x1), region = 61 }

// kernel: bert_embedder_forward.19
= control target key start
LH: loop header
LB: loop body
LE: loop exit
PB: predicated region body
PF: predicated region fallthrough
CT: control target
= control target key end

     0   :  { %7 = vsyncpa [#allocation3], 0  ;;  %s647_s0 = inlined_call_operand.vmem [shape: bf16[2,12,32], index: 0, kind: input, shape index: {}]   ;;  %s648_s1 = inlined_call_operand.vmem [shape: s32[2,8,3], index: 1, kind: input, shape index: {}]   ;;  %s649_s2 = inlined_call_operand.hbm [shape: f32[2,8,32], index: 2, kind: output, shape index: {}]  }
   0x1   :  { %9 = vsyncpa [#allocation3 + $0x1], 0  ;;  %s544_s9 = smov 0   ;;  %s546_s10 = smov 0  }
   0x2   :  { %s548_s11 = smov 0   ;;  %s550_s12 = smov 0  }
   0x3 LB: > { %s565_s13 = sadd.s32 4294967295, %s519_s12   ;;  %s374_s14 = sadd.s32 4294967294, %s519_s12   ;;  %s519_s12 = sphi %s550_s12, %s655_s12   ;;  %s515_s11 = sphi %s548_s11, %s654_s11   ;;  %s511_s10 = sphi %s546_s10, %s653_s10   ;;  %s507_s9 = sphi %s544_s9, %s652_s9  }
   0x4   : > { %s569_s15 = sadd.s32 1, %s519_s12   ;;  %s74_s16 = sadd.s32 1, %s515_s11 }
   0x5   : > { %s71_s17 = ssub.s32 %s519_s12, %s569_s15  ;;  %p84_p0 = scmp.ne.s32.totalorder %s515_s11, %s511_s10 }
   0x6   : > { %p72_p1 = scmp.eq.s32.totalorder %s71_s17, 0  ;;  %p85_p2 = scmp.eq.s32.totalorder %s565_s13, 1 }
   0x7   : > { %p90_p3 = scmp.ne.s32.totalorder %s511_s10, %s507_s9  ;;  %p91_p4 = scmp.eq.s32.totalorder %s374_s14, 1 }
   0x8   : > { %s580_s18 = scalar_select %p72_p1, %s515_s11, %s74_s16  }
   0x9   : > { %p582_p5 = por %p85_p2, %p84_p0  ;;  %p586_p6 = por %p91_p4, %p90_p3 }
   0xa   : > { %p377_p7 = scmp.ge.s32.totalorder %s519_s12, 1  ;;  %p124_p8 = scmp.lt.s32.totalorder %s519_s12, 3 }
   0xc   : > { %p125_p9 = pnand %p377_p7, %p124_p8 }
   0xd   : > { %p150_p10 = scmp.lt.s32.totalorder (!%p125_p9), %s565_s13, 1  ;;  %v521_v0 = vmov (!%p125_p9), 1   ;;  %v522_v1 = vmov (!%p125_p9), 0   ;;  %v523_v4 = vmov (!%p125_p9), 2   ;;  %vm205_vm1 = vcmask (!%p125_p9), 1043456   ;;  %s147_s29 = sand.u32 (!%p125_p9), 1, %s511_s10  }
   0xe   : > { %128 = sbr.rel (%p125_p9) target bundleno = 396 (0x18c), region = 28  ;;  %451 = vset.pattern.permute.xlu1 (!%p125_p9), %v521_v0  ;;  %450 = vset.pattern.permute.xlu0 (!%p125_p9), %v522_v1  ;;  %v524_v5 = vmov (!%p125_p9), 0.0|0.0   ;;  %vm525_vm2 = vmmov (!%p125_p9), 1   ;;  %vm526_vm4 = vmmov (!%p125_p9), 0   ;;  %v527_v7 = vmov (!%p125_p9), 0.0   ;;  %s378_s30 = sshll.u32 (!%p125_p9), %s147_s29, 3 }
   0xf   : > { %399 = vmatprep.subr.bf16.mxu0 (!%p125_p9), %v524_v5  ;;  %vm401_vm3 = vmpackc.low (!%p125_p9), %vm205_vm1, %vm525_vm2  ;;  %396 = vmatprep.mubr.msk.f32.mxu0 (!%p125_p9), %vm526_vm4, %v527_v7  ;;  %v164_v8 = vlaneseq (!%p125_p9)  ;;  %vm201_vm14 = vcmask (!%p125_p9), 97280   ;;  %s385_s3 = sshll.u32 (!%p125_p9), %s565_s13, 7  ;;  %s149_s4 = scalar_lea.vmem (!%p125_p9), [#allocation2], %s378_s30 }
  0x10   : > { %s303_s5 = sshll.u32 (!%p125_p9), %s149_s4, 4  ;;  %s605_s8 = scalar_lea.hbm (!%p125_p9), %s649_s2, %s385_s3  ;;  %s607_s5 = int_to_ptr.vmem [resolvable:$true] %s303_s5 }
  0x11   : > { %v165_v11 = vand.u32 (!%p125_p9), 127, %v164_v8  ;;  %s290_s14 = scalar_lea.sflag (!%p125_p9), [#allocation3], %s147_s29  ;;  %s528_s16 = smov (!%p125_p9), [#allocation2]  }
  0x12   : > { %s461_s17 = sshll.u32 (!%p125_p9), %s528_s16, 4  ;;  %s462_s17 = int_to_ptr.vmem [resolvable:$false] %s461_s17 }
  0x13   : > { %p464_p0 = scmp.lt.s32.totalorder (!%p125_p9), %s607_s5, %s462_s17 }
  0x15   : > { %s151_s21 = scalar_select %p150_p10, %s565_s13, 1 }
  0x16   : > { %s457_s13 = scalar_lea.vmem %s607_s5, 128 }
  0x17   : > { %s388_s22 = sshll.u32 %s151_s21, 3  ;;  %p458_p11 = scmp.ne.s32.totalorder %s607_s5, %s457_s13 }
  0x18   : > { %s158_s25 = scalar_lea.vmem %s648_s1, %s388_s22  ;;  %s154_s28 = scalar_lea.vmem %s647_s0, %s388_s22 }
  0x19   : > { %v163_v2 = vld [vmem:[%s158_s25] sm:$0xff]  ;;  %p459_p12 = pnand %p458_p11, %p582_p5  ;;  %s463_s21 = scalar_lea.vmem %s462_s17, 256 }
  0x1a   : > { %vm170_vm0 = vcmp.ne.s32.totalorder %v163_v2, 0  ;;  %180 = vperm.xlu1 %451, %v163_v2   ;;  %167 = vperm.xlu0 %450, %v163_v2   ;;  %v454_v6 = vld [vmem:[%s154_s28] sm:$0x3f]   ;;  %p465_p1 = scmp.lt.s32.totalorder %s463_s21, %s457_s13 }
  0x1b   : > { %v171_v3 = vsel %vm170_vm0, 1, %v522_v1  ;;  %402 = vmatpush3.bf16.msk.msra.mxu0 %vm401_vm3, %v454_v6  ;;  %vm287_vm0 = vcmask 261120   ;;  %p460_p13 = pneg %p459_p12 }
  0x1c   : > { %p466_p2 = por %p465_p1, %p464_p0 }
  0x1e   : > { %184 = vperm.xlu1 %451, %v171_v3   ;;  %173 = vperm.xlu0 %450, %v171_v3   ;;  %p467_p3 = pnand %p466_p2, %p460_p13 }
  0x22   : > { %453 = vset.pattern.permute.xlu1 %v523_v4  ;;  %452 = vset.pattern.permute.xlu0 %v523_v4 }
  0x23   : > { %195 = vperm.xlu1 %453, %v171_v3   ;;  %191 = vperm.xlu0 %452, %v163_v2  }
  0x99   : > { %v181_v9 = vpop.permute.xlu1 %180  ;;  %v168_v10 = vpop.permute.xlu0 %167 }
  0x9a   : > { %vm182_vm5 = vcmp.eq.s32.totalorder %v181_v9, %v165_v11  ;;  %vm169_vm8 = vcmp.eq.s32.totalorder %v168_v10, %v165_v11 }
  0x9d   : > { %v185_v12 = vpop.permute.xlu1 %184  ;;  %v174_v13 = vpop.permute.xlu0 %173 }
  0x9e   : > { %vm186_vm6 = vcmp.eq.s32.totalorder %v185_v12, 1  ;;  %vm175_vm7 = vcmp.eq.s32.totalorder %v174_v13, 1 }
  0x9f   : > { %vm187_vm9 = vmand %vm182_vm5, %vm186_vm6 }
  0xa0   : > { %vm176_vm10 = vmand %vm169_vm8, %vm175_vm7  ;;  %v188_v14 = vsel %vm187_vm9, 1.0, %v527_v7 }
  0xa1   : > { %v177_v15 = vsel %vm176_vm10, 1.0, %v527_v7 }
  0xa2   : > { %v196_v16 = vpop.permute.xlu1 %195  ;;  %v192_v17 = vpop.permute.xlu0 %191  ;;  %v189_v18 = vadd.f32 %v188_v14, %v177_v15 }
  0xa3   : > { %vm197_vm11 = vcmp.eq.s32.totalorder %v196_v16, 1  ;;  %vm193_vm12 = vcmp.eq.s32.totalorder %v192_v17, %v165_v11 }
  0xa4   : > { %vm198_vm13 = vmand %vm193_vm12, %vm197_vm11 }
  0xa5   : > { %v199_v19 = vsel %vm198_vm13, 1.0, %v527_v7 }
  0xa6   : > { %v200_v20 = vadd.f32 %v199_v19, %v189_v18 }
  0xa8   : > { %397 = vmatmul.mubr.msk.f32.vlgmr.msra.gmra.mrb[0].mxu0 %vm201_vm14, %v200_v20  ;;  %v279_v21 = vsel %vm201_vm14, %v200_v20, 0.0 }
  0xa9   : > { %280 = vadd.xlane.f32.xlu1 %v279_v21 }
 0x136   : > { %v281_v22 = vpop.xlane.xlu1 %280 }
 0x137   : > { %vm282_vm15 = vcmp.eq.f32.partialorder %v281_v22, 0.0 }
 0x138   : > { %v283_v23 = vsel %vm282_vm15, 1.0, %v527_v7 }
 0x139   : > { %v284_v24 = vadd.f32 %v283_v23, %v281_v22 }
 0x13b   : > { %455 = vrcp.f32 %v284_v24 }
 0x145   : > { %v456_v25 = vpop.eup %455 }
 0x17b   : > { %v275_v26 = vpop.f32.mrb[0].mxu0 }
 0x17c   : > { %v286_v27 = vmul.f32 %v456_v25, %v275_v26  ;;  %v398_v28 = vpop.f32.mrb[1].mxu0 }
 0x17e   : > { %288 = vst.msk [vmem:[%s149_s4] sm:$0xff] %vm287_vm0, %v286_v27 }
 0x17f   : > { %470 = shalt.err (!%p467_p3)
}
 0x180   : > { %s471_s22 = scalar_lea.hbm %s605_s8, 128  ;;  %s475_s25 = scalar_lea.hbm %s649_s2, 256 }
 0x181   : > { %p472_p4 = scmp.ne.s32.totalorder %s605_s8, %s471_s22  ;;  %p476_p9 = scmp.lt.u32.totalorder %s605_s8, %s649_s2 }
 0x182   : > { %p477_p10 = scmp.lt.u32.totalorder %s475_s25, %s471_s22  ;;  %p479_p12 = scmp.lt.u32.totalorder %s471_s22, %s605_s8 }
 0x183   : > { %p473_p7 = pnand %p472_p4, %p582_p5 }
 0x184   : > { %p478_p11 = por %p477_p10, %p476_p9 }
 0x185   : > { %p474_p8 = pneg %p473_p7 }
 0x186   : > { %p480_p13 = por %p479_p12, %p478_p11 }
 0x188   : > { %p481_p0 = pnand %p480_p13, %p474_p8 }
 0x18a   : > { %484 = shalt.err (!%p481_p0)
}
 0x18b   : > { %404 = dma.vmem_to_hbm [thread:$0]  (%p582_p5), %s607_s5, 128, %s605_s8, %s290_s14  }
 0x18c PF: > { %p410_p1 = scmp.ge.s32.totalorder %s519_s12, 2  ;;  %s315_s28 = sand.u32 1, %s507_s9  }
 0x18d   : > { %s316_s29 = scalar_lea.sflag [#allocation3], %s315_s28 }
 0x18e   : > { %p407_p2 = pnand %p410_p1, %p586_p6 }
 0x190   : > { %502 = dma.done.wait (!%p407_p2), %s316_s29, 128  }
 0x191   : > { %504 = vsyncadd (!%p407_p2), %s316_s29, 4294967168  ;;  %p12_p3 = scmp.ge.s32.totalorder %s569_s15, 4   ;;  %s652_s9 = smov %s511_s10 }
 0x192   : > { %s653_s10 = smov %s515_s11  ;;  %s654_s11 = smov %s580_s18 }
 0x193   : > { %s655_s12 = smov %s569_s15  ;;  %14 = sbr.rel (!%p12_p3) target bundleno = 3 (0x3), region = 66 }
 0x19a   :  { %321 = vsyncpa [#allocation3], 1 }
 0x19b   :  { %323 = vsyncpa [#allocation3 + $0x1], 1 }

// kernel: bert_embedder_forward.14
= control target key start
LH: loop header
LB: loop body
LE: loop exit
PB: predicated region body
PF: predicated region fallthrough
CT: control target
= control target key end

     0   :  { %s643_s24 = smov 0   ;;  %s700_s0 = inlined_call_operand.vmem [shape: bf16[24,32], index: 0, kind: input, shape index: {}]   ;;  %s701_s1 = inlined_call_operand.vmem [shape: bf16[32,64], index: 1, kind: input, shape index: {}]   ;;  %s702_s2 = inlined_call_operand.vmem [shape: f32[1,64], index: 2, kind: input, shape index: {}]   ;;  %s703_s3 = inlined_call_operand.vmem [shape: bf16[64,32], index: 3, kind: input, shape index: {}]   ;;  %s704_s4 = inlined_call_operand.vmem [shape: f32[1,32], index: 4, kind: input, shape index: {}]   ;;  %s705_s5 = inlined_call_operand.vmem [shape: f32[1,32], index: 5, kind: input, shape index: {}]   ;;  %s706_s6 = inlined_call_operand.vmem [shape: f32[1,32], index: 6, kind: input, shape index: {}]   ;;  %s707_s7 = inlined_call_operand.vmem [shape: bf16[24,32], index: 7, kind: output, shape index: {}]  }
   0x1 LB: > { %s524_s25 = sadd.s32 4294967295, %s599_s24   ;;  %p528_p0 = scmp.ge.s32.totalorder %s599_s24, 1  ;;  %s599_s24 = sphi %s643_s24, %s17_s24  }
   0x2   : > { %p236_p1 = scmp.lt.s32.totalorder %s599_s24, 4 }
   0x4   : > { %p237_p2 = pnand %p528_p0, %p236_p1 }
   0x5   : > { %v583_v0 = vld [vmem:[%s701_s1] sm:$0xff] (!%p237_p2)   ;;  %v601_v1 = vmov (!%p237_p2), 0.0   ;;  %v584_v2 = vld [vmem:[%s701_s1 + $0x8] sm:$0xff] (!%p237_p2)   ;;  %vm602_vm0 = vmmov (!%p237_p2), 0   ;;  %p266_p3 = scmp.lt.s32.totalorder (!%p237_p2), %s524_s25, 2  ;;  %vm299_vm1 = vcmask (!%p237_p2), 261120  }
   0x6   : > { %240 = sbr.rel (%p237_p2) target bundleno = 790 (0x316), region = 48  ;;  %553 = vmatprep.subr.bf16.mxu0 (!%p237_p2), %v601_v1  ;;  %561 = vmatprep.subr.bf16.mxu1 (!%p237_p2), %v601_v1  ;;  %v585_v4 = vld [vmem:[%s703_s3] sm:$0xff] (!%p237_p2)   ;;  %v586_v5 = vld [vmem:[%s703_s3 + $0x8] sm:$0xff] (!%p237_p2)   ;;  %v587_v6 = vld [vmem:[%s703_s3 + $0x10] sm:$0xff] (!%p237_p2)   ;;  %vm392_vm2 = vcmask (!%p237_p2), 523264   ;;  %vm469_vm3 = vcmask (!%p237_p2), 257024  }
   0x7   : > { %554 = vmatpush3.bf16.msra.mxu0 (!%p237_p2), %v583_v0  ;;  %557 = vmatprep.mubr.msk.bf16.mxu0 (!%p237_p2), %vm602_vm0, %v601_v1  ;;  %v588_v7 = vld [vmem:[%s703_s3 + $0x18] sm:$0xff] (!%p237_p2)   ;;  %v531_v8 = vld [vmem:[%s702_s2] ss:$0 sm:$0xff] (!%p237_p2) }
   0x8   : > { %555 = vmatprep.subr.bf16.mxu0 (!%p237_p2), %v601_v1  ;;  %569 = vmatprep.mubr.msk.bf16.mxu1 (!%p237_p2), %vm602_vm0, %v601_v1  ;;  %v535_v24 = vld [vmem:[%s704_s4] ss:$0 sm:$0xff] (!%p237_p2) }
   0x9   : > { %562 = vmatpush3.bf16.msra.mxu1 (!%p237_p2), %v585_v4  ;;  %v541_v42 = vld [vmem:[%s705_s5] ss:$0 sm:$0xff] (!%p237_p2) }
   0xa   : > { %563 = vmatprep.subr.bf16.mxu1 (!%p237_p2), %v601_v1  ;;  %v542_v44 = vld [vmem:[%s706_s6] ss:$0 sm:$0xff] (!%p237_p2) }
   0xb   : > { %556 = vmatpush3.bf16.msra.mxu0 (!%p237_p2), %v584_v2 }
   0xd   : > { %s709_s25 = smov (!%p266_p3, %s524_s25), 2  ;;  %564 = vmatpush3.bf16.msra.mxu1 %v586_v5 }
   0xe   : > { %s529_s30 = sshll.u32 %s709_s25, 2  ;;  %565 = vmatprep.subr.bf16.mxu1 %v601_v1 }
   0xf   : > { %s269_s10 = scalar_lea.vmem %s700_s0, %s529_s30  ;;  %s273_s9 = scalar_lea.vmem %s707_s7, %s529_s30 }
  0x10   : > { %v275_v3 = vld [vmem:[%s269_s10] sm:$0xf] }
  0x11   : > { %558 = vmatmul.mubr.msk.bf16.vlgmr.msra.gmra.mrb[0].mxu0 %vm299_vm1, %v275_v3  ;;  %566 = vmatpush3.bf16.msra.mxu1 %v587_v6  ;;  %v436_v25 = vunpack.c.l.bf16 %v275_v3 }
  0x12   : > { %567 = vmatprep.subr.bf16.mxu1 %v601_v1 }
  0x15   : > { %568 = vmatpush3.bf16.msra.mxu1 %v588_v7 }
  0xe4   : > { %v337_v9 = vpop.f32.mrb[0].mxu0 }
  0xe5   : > { %v338_v10 = vadd.f32 %v531_v8, %v337_v9  ;;  %v559_v11 = vpop.f32.mrb[1].mxu0 }
  0xe6   : > { %v340_v12 = vpop.f32.mrb[2].mxu0 }
  0xe7   : > { %v344_v13 = vmul.f32 0.044715, %v338_v10  ;;  %v560_v14 = vpop.f32.mrb[3].mxu0  ;;  %v343_v20 = vmul.f32 0.5, %v338_v10 }
  0xe9   : > { %v345_v15 = vmul.f32 %v344_v13, %v338_v10 }
  0xeb   : > { %v346_v16 = vmul.f32 %v345_v15, %v338_v10 }
  0xed   : > { %v347_v17 = vadd.f32 %v346_v16, %v338_v10 }
  0xef   : > { %v348_v18 = vmul.f32 0.7978846, %v347_v17 }
  0xf1   : > { %589 = vtanh.f32 %v348_v18 }
  0xfb   : > { %v590_v19 = vpop.eup %589 }
  0xfc   : > { %v350_v21 = vadd.f32 1.0, %v590_v19 }
  0xfe   : > { %v351_v22 = vmul.f32 %v350_v21, %v343_v20 }
 0x100   : > { %v352_v23 = vpack.c.bf16 %v351_v22, %v351_v22 }
 0x102   : > { %570 = vmatmul.mubr.msk.bf16.vlgmr.msra.gmra.mrb[0].mxu1 %vm392_vm2, %v352_v23 }
 0x1d5   : > { %v430_v26 = vpop.f32.mrb[0].mxu1 }
 0x1d6   : > { %v431_v27 = vadd.f32 %v535_v24, %v430_v26  ;;  %v571_v28 = vpop.f32.mrb[1].mxu1 }
 0x1d7   : > { %v433_v29 = vpop.f32.mrb[2].mxu1 }
 0x1d8   : > { %v572_v30 = vpop.f32.mrb[3].mxu1  ;;  %v437_v31 = vadd.f32 %v436_v25, %v431_v27 }
 0x1da   : > { %v438_v32 = vsel %vm299_vm1, %v437_v31, 0.0 }
 0x1db   : > { %439 = vadd.xlane.f32.xlu0 %v438_v32 }
 0x268   : > { %v440_v33 = vpop.xlane.xlu0 %439 }
 0x269   : > { %v442_v34 = vmul.f32 0.03125, %v440_v33 }
 0x26b   : > { %v443_v35 = vsub.f32 %v437_v31, %v442_v34 }
 0x26d   : > { %v444_v36 = vmul.f32 %v443_v35, %v443_v35 }
 0x26f   : > { %v445_v37 = vsel %vm299_vm1, %v444_v36, 0.0 }
 0x270   : > { %446 = vadd.xlane.f32.xlu0 %v445_v37 }
 0x2fd   : > { %v447_v38 = vpop.xlane.xlu0 %446 }
 0x2fe   : > { %v448_v39 = vmul.f32 0.03125, %v447_v38 }
 0x300   : > { %v449_v40 = vadd.f32 1e-12, %v448_v39 }
 0x302   : > { %591 = vrsqrt.f32 %v449_v40 }
 0x30c   : > { %v592_v41 = vpop.eup %591 }
 0x30d   : > { %v451_v43 = vmul.f32 %v592_v41, %v443_v35 }
 0x30f   : > { %v459_v45 = vmul.f32 %v541_v42, %v451_v43 }
 0x311   : > { %v467_v46 = vadd.f32 %v542_v44, %v459_v45 }
 0x313   : > { %v468_v47 = vpack.c.bf16 %v467_v46, %v467_v46 }
 0x315   : > { %470 = vst.msk [vmem:[%s273_s9] sm:$0xf] %vm469_vm3, %v468_v47 }
 0x316 PF: > { %s17_s24 = sadd.s32 1, %s599_s24  }
 0x317   : > { %p14_p4 = scmp.ge.s32.totalorder %s17_s24, 5  }
 0x319   :  { %16 = sbr.rel (!%p14_p4) target bundleno = 1 (0x1), region = 78 }

</bundles_post_ra>
